<compile_context>
chip_gen: v7x
topology: tpu7x:2x2x1
jax: 0.10.0
libtpu: 0.0.40
codegen_flags: <defaults>
</compile_context>

<pallas_src>
import jax
import jax.numpy as jnp
from jax.experimental import pallas as pl
from jax.experimental.pallas import tpu as pltpu


_SQRT_HALF = 0.7071067811865476


def _gelu(v):
    # exact erf-based GELU == PyTorch F.gelu / nn.GELU default (approximate='none')
    return 0.5 * v * (1.0 + jax.lax.erf(v * _SQRT_HALF))


def _round_up(n, m=8):
    return ((n + m - 1) // m) * m


# ---------------------------------------------------------------------------
# Pallas kernel
# ---------------------------------------------------------------------------
def make_pcblock_kernel(W, k_conv):
    """Kernel body factory.  W = image width (for flat lane shifts)."""

    def conv1x1(w_ref, b_ref, v):
        # Block-diagonal 1x1 conv on the whole slab: (rows, cols) @ (cols, HW)
        # on the MXU; bias column add on the VPU.
        return jnp.dot(w_ref[...], v, preferred_element_type=jnp.float32) + b_ref[...]

    def kernel(x_ref, w1a_ref, b1a_ref, w1b_ref, b1b_ref, wp_ref, bp_ref,
               w2a_ref, b2a_ref, w2b_ref, b2b_ref, coeff_ref, dwb_ref, o_ref):
        HW = x_ref.shape[-1]
        x = x_ref[...]                                        # (RA_in, HW)

        # ---- x = gelu(x + ffn1(x)) : 1x1 -> GELU -> 1x1 ---------------------
        h = _gelu(conv1x1(w1a_ref, b1a_ref, x))
        x = _gelu(x + conv1x1(w1b_ref, b1b_ref, h))

        # ---- depthwise convs: x = gelu(x + dwconv_k(x)) ----------------------
        # coeff_ref[tap] already holds (dw weight column * 0/1 border mask row),
        # so each tap is one roll (XLU) + one FMA (VPU).
        tap = 0
        for idx, k in enumerate(k_conv):
            p = k // 2
            acc = dwb_ref[idx]                                # (RA_in, 1) bias
            for i in range(k):
                for j in range(k):
                    s = (i - p) * W + (j - p)                 # flat lane shift
                    rolled = x if s == 0 else pltpu.roll(x, shift=(-s) % HW, axis=1)
                    acc = acc + coeff_ref[tap] * rolled
                    tap += 1
            x = _gelu(x + acc)

        # ---- x = gelu(x + pw(x)) ; out = ffn2(x) -----------------------------
        x = _gelu(x + conv1x1(wp_ref, bp_ref, x))
        h = _gelu(conv1x1(w2a_ref, b2a_ref, x))
        o_ref[...] = conv1x1(w2b_ref, b2b_ref, h)             # lane-dense store

    return kernel


# ---------------------------------------------------------------------------
# Wrapper: packing + pallas_call
# ---------------------------------------------------------------------------
def _block_diag_1x1(w, b, n_rep, rows_pad, cols_pad):
    """Pack a 1x1 conv (w: (cin, cout) channels-last, b: (1, cout)) as a
    block-diagonal (rows_pad, cols_pad) matrix acting on the whole
    (n_rep*cin, HW) slab, plus a (rows_pad, 1) bias column.  Padded
    rows/columns are zero so padded slab rows stay exactly zero."""
    cin, cout = w.shape
    wt = jnp.asarray(w, jnp.float32).T                               # (cout, cin)
    bd = jnp.kron(jnp.eye(n_rep, dtype=jnp.float32), wt)             # (n*cout, n*cin)
    bd = jnp.pad(bd, ((0, rows_pad - n_rep * cout), (0, cols_pad - n_rep * cin)))
    bias = jnp.tile(jnp.asarray(b, jnp.float32)[0], (n_rep,))
    bias = jnp.pad(bias, (0, rows_pad - n_rep * cout))[:, None]      # (rows_pad, 1)
    return bd, bias


def pcblock_forward_pallas(x_nchw, params, k_conv):
    N, C_in, H, W = x_nchw.shape
    C_out = params["w2b"].shape[1]
    C_mid = params["w1a"].shape[1]
    HW = H * W

    RA_in = _round_up(N * C_in)
    RA_mid = _round_up(N * C_mid)
    RA_out = _round_up(N * C_out)

    # NCHW -> (N*C_in, HW): pure reshape; pad rows to the 8-sublane tile.
    x2d = x_nchw.reshape(N * C_in, HW).astype(jnp.float32)
    x2d = jnp.pad(x2d, ((0, RA_in - N * C_in), (0, 0)))

    # ---- block-diagonal 1x1 convs (whole slab at once, MXU-friendly) --------
    w1a, b1a = _block_diag_1x1(params["w1a"], params["b1a"], N, RA_mid, RA_in)
    w1b, b1b = _block_diag_1x1(params["w1b"], params["b1b"], N, RA_in, RA_mid)
    wp_, bp_ = _block_diag_1x1(params["wp"], params["bp"], N, RA_in, RA_in)
    w2a, b2a = _block_diag_1x1(params["w2a"], params["b2a"], N, RA_mid, RA_in)
    w2b, b2b = _block_diag_1x1(params["w2b"], params["b2b"], N, RA_out, RA_mid)

    # ---- per-tap combined (dw weight x 0/1 border mask) coefficient slabs ---
    # NOTE: folds the weights, so recompute whenever params change.
    pos = jnp.arange(HW)
    hh, ww = pos // W, pos % W
    coeff_rows, dwb_rows = [], []
    for i_dw, k in enumerate(k_conv):
        wd = jnp.asarray(params[f"wd{i_dw}"], jnp.float32)           # (k, k, C_in)
        bd = jnp.asarray(params[f"bd{i_dw}"], jnp.float32)[0]        # (C_in,)
        brow = jnp.pad(jnp.tile(bd, (N,)), (0, RA_in - N * C_in))
        dwb_rows.append(brow[:, None])                               # (RA_in, 1)
        p = k // 2
        for i in range(k):
            for j in range(k):
                di, dj = i - p, j - p
                valid = ((hh + di >= 0) & (hh + di < H) &
                         (ww + dj >= 0) & (ww + dj < W)).astype(jnp.float32)
                wcol = jnp.pad(jnp.tile(wd[i, j, :], (N,)), (0, RA_in - N * C_in))
                coeff_rows.append(wcol[:, None] * valid[None, :])    # (RA_in, HW)
    coeff = jnp.stack(coeff_rows, axis=0)                            # (taps, RA_in, HW)
    dwbias = jnp.stack(dwb_rows, axis=0)                             # (n_dw, RA_in, 1)

    kernel = make_pcblock_kernel(W, tuple(k_conv))

    def spec2d(a):
        return pl.BlockSpec(a.shape, lambda i: (0, 0))

    def spec3d(a):
        return pl.BlockSpec(a.shape, lambda i: (0, 0, 0))

    y2d = pl.pallas_call(
        kernel,
        out_shape=jax.ShapeDtypeStruct((RA_out, HW), jnp.float32),
        grid=(1,),
        in_specs=[
            spec2d(x2d),
            spec2d(w1a), spec2d(b1a),
            spec2d(w1b), spec2d(b1b),
            spec2d(wp_), spec2d(bp_),
            spec2d(w2a), spec2d(b2a),
            spec2d(w2b), spec2d(b2b),
            spec3d(coeff), spec3d(dwbias),
        ],
        out_specs=pl.BlockSpec((RA_out, HW), lambda i: (0, 0)),
        compiler_params=pltpu.CompilerParams(
            dimension_semantics=("arbitrary",)),
    )(x2d, w1a, b1a, w1b, b1b, wp_, bp_, w2a, b2a, w2b, b2b, coeff, dwbias)

    # Drop the zero padding rows, back to NCHW (pure reshape, no transpose).
    return y2d[:N * C_out].reshape(N, C_out, H, W)


# ---------------------------------------------------------------------------
# Pure-JAX (lax.conv) reference in NCHW, mirroring the PyTorch module exactly.
# ---------------------------------------------------------------------------
def pcblock_forward_reference(x, params, k_conv):
    P = jax.lax.Precision.HIGHEST

    def conv1x1(v, w, b):  # w: (Cin, Cout) channels-last matrix, b: (1, Cout)
        wk = jnp.transpose(w)[:, :, None, None]  # (Cout, Cin, 1, 1)
        y = jax.lax.conv_general_dilated(
            v, wk, (1, 1), "VALID",
            dimension_numbers=("NCHW", "OIHW", "NCHW"), precision=P)
        return y + b[0][None, :, None, None]

    def dwconv(v, w, b, k):  # w: (k, k, C), b: (1, C)
        C = v.shape[1]
        wk = jnp.transpose(w, (2, 0, 1))[:, None, :, :]  # (C, 1, k, k)
        y = jax.lax.conv_general_dilated(
            v, wk, (1, 1), [(k // 2, k // 2)] * 2,
            dimension_numbers=("NCHW", "OIHW", "NCHW"),
            feature_group_count=C, precision=P)
        return y + b[0][None, :, None, None]

    g = _gelu
    h = g(conv1x1(x, params["w1a"], params["b1a"]))
    x = g(x + conv1x1(h, params["w1b"], params["b1b"]))
    for i, k in enumerate(k_conv):
        x = g(x + dwconv(x, params[f"wd{i}"], params[f"bd{i}"], k))
    x = g(x + conv1x1(x, params["wp"], params["bp"]))
    h = g(conv1x1(x, params["w2a"], params["b2a"]))
    return conv1x1(h, params["w2b"], params["b2b"])


def init_params(key, C_in, C_out, k_conv):
    C_mid = int(1.5 * C_in)
    keys = jax.random.split(key, 16 + 2 * len(k_conv))
    ki = iter(range(len(keys)))
    s = 0.1

    def nrm(shape):
        return (s * jax.random.normal(keys[next(ki)], shape)).astype(jnp.float32)

    params = {
        "w1a": nrm((C_in, C_mid)), "b1a": nrm((1, C_mid)),
        "w1b": nrm((C_mid, C_in)), "b1b": nrm((1, C_in)),
        "wp": nrm((C_in, C_in)), "bp": nrm((1, C_in)),
        "w2a": nrm((C_in, C_mid)), "b2a": nrm((1, C_mid)),
        "w2b": nrm((C_mid, C_out)), "b2b": nrm((1, C_out)),
    }
    for i, k in enumerate(k_conv):
        params[f"wd{i}"] = nrm((k, k, C_in))
        params[f"bd{i}"] = nrm((1, C_in))
    return params


if __name__ == "__main__":
    key = jax.random.PRNGKey(0)
    kx, kp = jax.random.split(key)

    N, C_in, H, W = 2, 4, 16, 16
    C_out = 6
    k_conv = (1, 7)  # matches args.PCUpdater_conv = [1, 7] used by the GRU PCBlock

    x = jax.random.normal(kx, (N, C_in, H, W), dtype=jnp.float32)
    params = init_params(kp, C_in, C_out, k_conv)

    y_pallas = jax.block_until_ready(pcblock_forward_pallas(x, params, k_conv))
    y_ref = jax.block_until_ready(pcblock_forward_reference(x, params, k_conv))

    assert y_pallas.shape == (N, C_out, H, W), y_pallas.shape
    max_err = float(jnp.max(jnp.abs(y_pallas - y_ref)))
    assert jnp.allclose(y_pallas, y_ref, rtol=2e-3, atol=5e-3), max_err

    print("KERNEL_OK")
</pallas_src>

<mosaic_0001>
module attributes {stable_mosaic.version = 11 : i64} {
  func.func @kernel(%arg0: i32, %arg1: memref<8x256xf32, #tpu.memory_space<vmem>>, %arg2: memref<16x8xf32, #tpu.memory_space<vmem>>, %arg3: memref<16x1xf32, #tpu.memory_space<vmem>>, %arg4: memref<8x16xf32, #tpu.memory_space<vmem>>, %arg5: memref<8x1xf32, #tpu.memory_space<vmem>>, %arg6: memref<8x8xf32, #tpu.memory_space<vmem>>, %arg7: memref<8x1xf32, #tpu.memory_space<vmem>>, %arg8: memref<16x8xf32, #tpu.memory_space<vmem>>, %arg9: memref<16x1xf32, #tpu.memory_space<vmem>>, %arg10: memref<16x16xf32, #tpu.memory_space<vmem>>, %arg11: memref<16x1xf32, #tpu.memory_space<vmem>>, %arg12: memref<50x8x256xf32, #tpu.memory_space<vmem>>, %arg13: memref<2x8x1xf32, #tpu.memory_space<vmem>>, %arg14: memref<16x256xf32, #tpu.memory_space<vmem>>) attributes {dimension_semantics = [#tpu.dimension_semantics<arbitrary>], iteration_bounds = array<i64: 1>, scalar_prefetch = 0 : i64, scratch_operands = 0 : i64, tpu.core_type = #tpu.core_type<tc>, window_params = [{pipeline_mode = #tpu.pipeline_mode<synchronous>, transform_indices = @transform_0, window_bounds = array<i64: 8, 256>}, {pipeline_mode = #tpu.pipeline_mode<synchronous>, transform_indices = @transform_1, window_bounds = array<i64: 16, 8>}, {pipeline_mode = #tpu.pipeline_mode<synchronous>, transform_indices = @transform_2, window_bounds = array<i64: 16, 1>}, {pipeline_mode = #tpu.pipeline_mode<synchronous>, transform_indices = @transform_3, window_bounds = array<i64: 8, 16>}, {pipeline_mode = #tpu.pipeline_mode<synchronous>, transform_indices = @transform_4, window_bounds = array<i64: 8, 1>}, {pipeline_mode = #tpu.pipeline_mode<synchronous>, transform_indices = @transform_5, window_bounds = array<i64: 8, 8>}, {pipeline_mode = #tpu.pipeline_mode<synchronous>, transform_indices = @transform_6, window_bounds = array<i64: 8, 1>}, {pipeline_mode = #tpu.pipeline_mode<synchronous>, transform_indices = @transform_7, window_bounds = array<i64: 16, 8>}, {pipeline_mode = #tpu.pipeline_mode<synchronous>, transform_indices = @transform_8, window_bounds = array<i64: 16, 1>}, {pipeline_mode = #tpu.pipeline_mode<synchronous>, transform_indices = @transform_9, window_bounds = array<i64: 16, 16>}, {pipeline_mode = #tpu.pipeline_mode<synchronous>, transform_indices = @transform_10, window_bounds = array<i64: 16, 1>}, {pipeline_mode = #tpu.pipeline_mode<synchronous>, transform_indices = @transform_11, window_bounds = array<i64: 50, 8, 256>}, {pipeline_mode = #tpu.pipeline_mode<synchronous>, transform_indices = @transform_12, window_bounds = array<i64: 2, 8, 1>}, {pipeline_mode = #tpu.pipeline_mode<synchronous>, transform_indices = @transform_13, window_bounds = array<i64: 16, 256>}]} {
    %c0 = arith.constant 0 : index
    %c0_0 = arith.constant 0 : index
    %0 = vector.load %arg1[%c0, %c0_0] : memref<8x256xf32, #tpu.memory_space<vmem>>, vector<8x256xf32>
    %c0_1 = arith.constant 0 : index
    %c0_2 = arith.constant 0 : index
    %1 = vector.load %arg2[%c0_1, %c0_2] : memref<16x8xf32, #tpu.memory_space<vmem>>, vector<16x8xf32>
    %cst = arith.constant dense<0.000000e+00> : vector<16x256xf32>
    %2 = tpu.matmul %1, %0, %cst {dimension_numbers = #tpu.dot_dimension_numbers<[1], [0], [0], [1], [0, 0, 1, 1], [], []>} : vector<16x8xf32>, vector<8x256xf32>, vector<16x256xf32> -> vector<16x256xf32>
    %c0_3 = arith.constant 0 : index
    %c0_4 = arith.constant 0 : index
    %3 = vector.load %arg3[%c0_3, %c0_4] : memref<16x1xf32, #tpu.memory_space<vmem>>, vector<16x1xf32>
    %4 = vector.broadcast %3 : vector<16x1xf32> to vector<16x256xf32>
    %5 = arith.addf %2, %4 : vector<16x256xf32>
    %cst_5 = arith.constant 5.000000e-01 : f32
    %6 = vector.broadcast %cst_5 : f32 to vector<16x256xf32>
    %7 = arith.mulf %6, %5 : vector<16x256xf32>
    %cst_6 = arith.constant 0.707106769 : f32
    %8 = vector.broadcast %cst_6 : f32 to vector<16x256xf32>
    %9 = arith.mulf %5, %8 : vector<16x256xf32>
    %10 = math.erf %9 : vector<16x256xf32>
    %cst_7 = arith.constant 1.000000e+00 : f32
    %11 = vector.broadcast %cst_7 : f32 to vector<16x256xf32>
    %12 = arith.addf %11, %10 : vector<16x256xf32>
    %13 = arith.mulf %7, %12 : vector<16x256xf32>
    %c0_8 = arith.constant 0 : index
    %c0_9 = arith.constant 0 : index
    %14 = vector.load %arg4[%c0_8, %c0_9] : memref<8x16xf32, #tpu.memory_space<vmem>>, vector<8x16xf32>
    %cst_10 = arith.constant dense<0.000000e+00> : vector<8x256xf32>
    %15 = tpu.matmul %14, %13, %cst_10 {dimension_numbers = #tpu.dot_dimension_numbers<[1], [0], [0], [1], [0, 0, 1, 1], [], []>} : vector<8x16xf32>, vector<16x256xf32>, vector<8x256xf32> -> vector<8x256xf32>
    %c0_11 = arith.constant 0 : index
    %c0_12 = arith.constant 0 : index
    %16 = vector.load %arg5[%c0_11, %c0_12] : memref<8x1xf32, #tpu.memory_space<vmem>>, vector<8x1xf32>
    %17 = vector.broadcast %16 : vector<8x1xf32> to vector<8x256xf32>
    %18 = arith.addf %15, %17 : vector<8x256xf32>
    %19 = arith.addf %0, %18 : vector<8x256xf32>
    %cst_13 = arith.constant 5.000000e-01 : f32
    %20 = vector.broadcast %cst_13 : f32 to vector<8x256xf32>
    %21 = arith.mulf %20, %19 : vector<8x256xf32>
    %cst_14 = arith.constant 0.707106769 : f32
    %22 = vector.broadcast %cst_14 : f32 to vector<8x256xf32>
    %23 = arith.mulf %19, %22 : vector<8x256xf32>
    %24 = math.erf %23 : vector<8x256xf32>
    %cst_15 = arith.constant 1.000000e+00 : f32
    %25 = vector.broadcast %cst_15 : f32 to vector<8x256xf32>
    %26 = arith.addf %25, %24 : vector<8x256xf32>
    %27 = arith.mulf %21, %26 : vector<8x256xf32>
    %c0_16 = arith.constant 0 : index
    %c0_17 = arith.constant 0 : index
    %c0_18 = arith.constant 0 : index
    %28 = vector.load %arg13[%c0_16, %c0_17, %c0_18] : memref<2x8x1xf32, #tpu.memory_space<vmem>>, vector<1x8x1xf32>
    %29 = vector.shape_cast %28 : vector<1x8x1xf32> to vector<8x1xf32>
    %c0_19 = arith.constant 0 : index
    %c0_20 = arith.constant 0 : index
    %c0_21 = arith.constant 0 : index
    %30 = vector.load %arg12[%c0_19, %c0_20, %c0_21] : memref<50x8x256xf32, #tpu.memory_space<vmem>>, vector<1x8x256xf32>
    %31 = vector.shape_cast %30 : vector<1x8x256xf32> to vector<8x256xf32>
    %32 = arith.mulf %31, %27 : vector<8x256xf32>
    %33 = vector.broadcast %29 : vector<8x1xf32> to vector<8x256xf32>
    %34 = arith.addf %33, %32 : vector<8x256xf32>
    %35 = arith.addf %27, %34 : vector<8x256xf32>
    %cst_22 = arith.constant 5.000000e-01 : f32
    %36 = vector.broadcast %cst_22 : f32 to vector<8x256xf32>
    %37 = arith.mulf %36, %35 : vector<8x256xf32>
    %cst_23 = arith.constant 0.707106769 : f32
    %38 = vector.broadcast %cst_23 : f32 to vector<8x256xf32>
    %39 = arith.mulf %35, %38 : vector<8x256xf32>
    %40 = math.erf %39 : vector<8x256xf32>
    %cst_24 = arith.constant 1.000000e+00 : f32
    %41 = vector.broadcast %cst_24 : f32 to vector<8x256xf32>
    %42 = arith.addf %41, %40 : vector<8x256xf32>
    %43 = arith.mulf %37, %42 : vector<8x256xf32>
    %c1 = arith.constant 1 : index
    %c0_25 = arith.constant 0 : index
    %c0_26 = arith.constant 0 : index
    %44 = vector.load %arg13[%c1, %c0_25, %c0_26] : memref<2x8x1xf32, #tpu.memory_space<vmem>>, vector<1x8x1xf32>
    %45 = vector.shape_cast %44 : vector<1x8x1xf32> to vector<8x1xf32>
    %c51_i32 = arith.constant 51 : i32
    %46 = tpu.dynamic_rotate %43 by %c51_i32 dim 1 : vector<8x256xf32>, i32 -> vector<8x256xf32>
    %c1_27 = arith.constant 1 : index
    %c0_28 = arith.constant 0 : index
    %c0_29 = arith.constant 0 : index
    %47 = vector.load %arg12[%c1_27, %c0_28, %c0_29] : memref<50x8x256xf32, #tpu.memory_space<vmem>>, vector<1x8x256xf32>
    %48 = vector.shape_cast %47 : vector<1x8x256xf32> to vector<8x256xf32>
    %49 = arith.mulf %48, %46 : vector<8x256xf32>
    %50 = vector.broadcast %45 : vector<8x1xf32> to vector<8x256xf32>
    %51 = arith.addf %50, %49 : vector<8x256xf32>
    %c50_i32 = arith.constant 50 : i32
    %52 = tpu.dynamic_rotate %43 by %c50_i32 dim 1 : vector<8x256xf32>, i32 -> vector<8x256xf32>
    %c2 = arith.constant 2 : index
    %c0_30 = arith.constant 0 : index
    %c0_31 = arith.constant 0 : index
    %53 = vector.load %arg12[%c2, %c0_30, %c0_31] : memref<50x8x256xf32, #tpu.memory_space<vmem>>, vector<1x8x256xf32>
    %54 = vector.shape_cast %53 : vector<1x8x256xf32> to vector<8x256xf32>
    %55 = arith.mulf %54, %52 : vector<8x256xf32>
    %56 = arith.addf %51, %55 : vector<8x256xf32>
    %c49_i32 = arith.constant 49 : i32
    %57 = tpu.dynamic_rotate %43 by %c49_i32 dim 1 : vector<8x256xf32>, i32 -> vector<8x256xf32>
    %c3 = arith.constant 3 : index
    %c0_32 = arith.constant 0 : index
    %c0_33 = arith.constant 0 : index
    %58 = vector.load %arg12[%c3, %c0_32, %c0_33] : memref<50x8x256xf32, #tpu.memory_space<vmem>>, vector<1x8x256xf32>
    %59 = vector.shape_cast %58 : vector<1x8x256xf32> to vector<8x256xf32>
    %60 = arith.mulf %59, %57 : vector<8x256xf32>
    %61 = arith.addf %56, %60 : vector<8x256xf32>
    %c48_i32 = arith.constant 48 : i32
    %62 = tpu.dynamic_rotate %43 by %c48_i32 dim 1 : vector<8x256xf32>, i32 -> vector<8x256xf32>
    %c4 = arith.constant 4 : index
    %c0_34 = arith.constant 0 : index
    %c0_35 = arith.constant 0 : index
    %63 = vector.load %arg12[%c4, %c0_34, %c0_35] : memref<50x8x256xf32, #tpu.memory_space<vmem>>, vector<1x8x256xf32>
    %64 = vector.shape_cast %63 : vector<1x8x256xf32> to vector<8x256xf32>
    %65 = arith.mulf %64, %62 : vector<8x256xf32>
    %66 = arith.addf %61, %65 : vector<8x256xf32>
    %c47_i32 = arith.constant 47 : i32
    %67 = tpu.dynamic_rotate %43 by %c47_i32 dim 1 : vector<8x256xf32>, i32 -> vector<8x256xf32>
    %c5 = arith.constant 5 : index
    %c0_36 = arith.constant 0 : index
    %c0_37 = arith.constant 0 : index
    %68 = vector.load %arg12[%c5, %c0_36, %c0_37] : memref<50x8x256xf32, #tpu.memory_space<vmem>>, vector<1x8x256xf32>
    %69 = vector.shape_cast %68 : vector<1x8x256xf32> to vector<8x256xf32>
    %70 = arith.mulf %69, %67 : vector<8x256xf32>
    %71 = arith.addf %66, %70 : vector<8x256xf32>
    %c46_i32 = arith.constant 46 : i32
    %72 = tpu.dynamic_rotate %43 by %c46_i32 dim 1 : vector<8x256xf32>, i32 -> vector<8x256xf32>
    %c6 = arith.constant 6 : index
    %c0_38 = arith.constant 0 : index
    %c0_39 = arith.constant 0 : index
    %73 = vector.load %arg12[%c6, %c0_38, %c0_39] : memref<50x8x256xf32, #tpu.memory_space<vmem>>, vector<1x8x256xf32>
    %74 = vector.shape_cast %73 : vector<1x8x256xf32> to vector<8x256xf32>
    %75 = arith.mulf %74, %72 : vector<8x256xf32>
    %76 = arith.addf %71, %75 : vector<8x256xf32>
    %c45_i32 = arith.constant 45 : i32
    %77 = tpu.dynamic_rotate %43 by %c45_i32 dim 1 : vector<8x256xf32>, i32 -> vector<8x256xf32>
    %c7 = arith.constant 7 : index
    %c0_40 = arith.constant 0 : index
    %c0_41 = arith.constant 0 : index
    %78 = vector.load %arg12[%c7, %c0_40, %c0_41] : memref<50x8x256xf32, #tpu.memory_space<vmem>>, vector<1x8x256xf32>
    %79 = vector.shape_cast %78 : vector<1x8x256xf32> to vector<8x256xf32>
    %80 = arith.mulf %79, %77 : vector<8x256xf32>
    %81 = arith.addf %76, %80 : vector<8x256xf32>
    %c35_i32 = arith.constant 35 : i32
    %82 = tpu.dynamic_rotate %43 by %c35_i32 dim 1 : vector<8x256xf32>, i32 -> vector<8x256xf32>
    %c8 = arith.constant 8 : index
    %c0_42 = arith.constant 0 : index
    %c0_43 = arith.constant 0 : index
    %83 = vector.load %arg12[%c8, %c0_42, %c0_43] : memref<50x8x256xf32, #tpu.memory_space<vmem>>, vector<1x8x256xf32>
    %84 = vector.shape_cast %83 : vector<1x8x256xf32> to vector<8x256xf32>
    %85 = arith.mulf %84, %82 : vector<8x256xf32>
    %86 = arith.addf %81, %85 : vector<8x256xf32>
    %c34_i32 = arith.constant 34 : i32
    %87 = tpu.dynamic_rotate %43 by %c34_i32 dim 1 : vector<8x256xf32>, i32 -> vector<8x256xf32>
    %c9 = arith.constant 9 : index
    %c0_44 = arith.constant 0 : index
    %c0_45 = arith.constant 0 : index
    %88 = vector.load %arg12[%c9, %c0_44, %c0_45] : memref<50x8x256xf32, #tpu.memory_space<vmem>>, vector<1x8x256xf32>
    %89 = vector.shape_cast %88 : vector<1x8x256xf32> to vector<8x256xf32>
    %90 = arith.mulf %89, %87 : vector<8x256xf32>
    %91 = arith.addf %86, %90 : vector<8x256xf32>
    %c33_i32 = arith.constant 33 : i32
    %92 = tpu.dynamic_rotate %43 by %c33_i32 dim 1 : vector<8x256xf32>, i32 -> vector<8x256xf32>
    %c10 = arith.constant 10 : index
    %c0_46 = arith.constant 0 : index
    %c0_47 = arith.constant 0 : index
    %93 = vector.load %arg12[%c10, %c0_46, %c0_47] : memref<50x8x256xf32, #tpu.memory_space<vmem>>, vector<1x8x256xf32>
    %94 = vector.shape_cast %93 : vector<1x8x256xf32> to vector<8x256xf32>
    %95 = arith.mulf %94, %92 : vector<8x256xf32>
    %96 = arith.addf %91, %95 : vector<8x256xf32>
    %c32_i32 = arith.constant 32 : i32
    %97 = tpu.dynamic_rotate %43 by %c32_i32 dim 1 : vector<8x256xf32>, i32 -> vector<8x256xf32>
    %c11 = arith.constant 11 : index
    %c0_48 = arith.constant 0 : index
    %c0_49 = arith.constant 0 : index
    %98 = vector.load %arg12[%c11, %c0_48, %c0_49] : memref<50x8x256xf32, #tpu.memory_space<vmem>>, vector<1x8x256xf32>
    %99 = vector.shape_cast %98 : vector<1x8x256xf32> to vector<8x256xf32>
    %100 = arith.mulf %99, %97 : vector<8x256xf32>
    %101 = arith.addf %96, %100 : vector<8x256xf32>
    %c31_i32 = arith.constant 31 : i32
    %102 = tpu.dynamic_rotate %43 by %c31_i32 dim 1 : vector<8x256xf32>, i32 -> vector<8x256xf32>
    %c12 = arith.constant 12 : index
    %c0_50 = arith.constant 0 : index
    %c0_51 = arith.constant 0 : index
    %103 = vector.load %arg12[%c12, %c0_50, %c0_51] : memref<50x8x256xf32, #tpu.memory_space<vmem>>, vector<1x8x256xf32>
    %104 = vector.shape_cast %103 : vector<1x8x256xf32> to vector<8x256xf32>
    %105 = arith.mulf %104, %102 : vector<8x256xf32>
    %106 = arith.addf %101, %105 : vector<8x256xf32>
    %c30_i32 = arith.constant 30 : i32
    %107 = tpu.dynamic_rotate %43 by %c30_i32 dim 1 : vector<8x256xf32>, i32 -> vector<8x256xf32>
    %c13 = arith.constant 13 : index
    %c0_52 = arith.constant 0 : index
    %c0_53 = arith.constant 0 : index
    %108 = vector.load %arg12[%c13, %c0_52, %c0_53] : memref<50x8x256xf32, #tpu.memory_space<vmem>>, vector<1x8x256xf32>
    %109 = vector.shape_cast %108 : vector<1x8x256xf32> to vector<8x256xf32>
    %110 = arith.mulf %109, %107 : vector<8x256xf32>
    %111 = arith.addf %106, %110 : vector<8x256xf32>
    %c29_i32 = arith.constant 29 : i32
    %112 = tpu.dynamic_rotate %43 by %c29_i32 dim 1 : vector<8x256xf32>, i32 -> vector<8x256xf32>
    %c14 = arith.constant 14 : index
    %c0_54 = arith.constant 0 : index
    %c0_55 = arith.constant 0 : index
    %113 = vector.load %arg12[%c14, %c0_54, %c0_55] : memref<50x8x256xf32, #tpu.memory_space<vmem>>, vector<1x8x256xf32>
    %114 = vector.shape_cast %113 : vector<1x8x256xf32> to vector<8x256xf32>
    %115 = arith.mulf %114, %112 : vector<8x256xf32>
    %116 = arith.addf %111, %115 : vector<8x256xf32>
    %c19_i32 = arith.constant 19 : i32
    %117 = tpu.dynamic_rotate %43 by %c19_i32 dim 1 : vector<8x256xf32>, i32 -> vector<8x256xf32>
    %c15 = arith.constant 15 : index
    %c0_56 = arith.constant 0 : index
    %c0_57 = arith.constant 0 : index
    %118 = vector.load %arg12[%c15, %c0_56, %c0_57] : memref<50x8x256xf32, #tpu.memory_space<vmem>>, vector<1x8x256xf32>
    %119 = vector.shape_cast %118 : vector<1x8x256xf32> to vector<8x256xf32>
    %120 = arith.mulf %119, %117 : vector<8x256xf32>
    %121 = arith.addf %116, %120 : vector<8x256xf32>
    %c18_i32 = arith.constant 18 : i32
    %122 = tpu.dynamic_rotate %43 by %c18_i32 dim 1 : vector<8x256xf32>, i32 -> vector<8x256xf32>
    %c16 = arith.constant 16 : index
    %c0_58 = arith.constant 0 : index
    %c0_59 = arith.constant 0 : index
    %123 = vector.load %arg12[%c16, %c0_58, %c0_59] : memref<50x8x256xf32, #tpu.memory_space<vmem>>, vector<1x8x256xf32>
    %124 = vector.shape_cast %123 : vector<1x8x256xf32> to vector<8x256xf32>
    %125 = arith.mulf %124, %122 : vector<8x256xf32>
    %126 = arith.addf %121, %125 : vector<8x256xf32>
    %c17_i32 = arith.constant 17 : i32
    %127 = tpu.dynamic_rotate %43 by %c17_i32 dim 1 : vector<8x256xf32>, i32 -> vector<8x256xf32>
    %c17 = arith.constant 17 : index
    %c0_60 = arith.constant 0 : index
    %c0_61 = arith.constant 0 : index
    %128 = vector.load %arg12[%c17, %c0_60, %c0_61] : memref<50x8x256xf32, #tpu.memory_space<vmem>>, vector<1x8x256xf32>
    %129 = vector.shape_cast %128 : vector<1x8x256xf32> to vector<8x256xf32>
    %130 = arith.mulf %129, %127 : vector<8x256xf32>
    %131 = arith.addf %126, %130 : vector<8x256xf32>
    %c16_i32 = arith.constant 16 : i32
    %132 = tpu.dynamic_rotate %43 by %c16_i32 dim 1 : vector<8x256xf32>, i32 -> vector<8x256xf32>
    %c18 = arith.constant 18 : index
    %c0_62 = arith.constant 0 : index
    %c0_63 = arith.constant 0 : index
    %133 = vector.load %arg12[%c18, %c0_62, %c0_63] : memref<50x8x256xf32, #tpu.memory_space<vmem>>, vector<1x8x256xf32>
    %134 = vector.shape_cast %133 : vector<1x8x256xf32> to vector<8x256xf32>
    %135 = arith.mulf %134, %132 : vector<8x256xf32>
    %136 = arith.addf %131, %135 : vector<8x256xf32>
    %c15_i32 = arith.constant 15 : i32
    %137 = tpu.dynamic_rotate %43 by %c15_i32 dim 1 : vector<8x256xf32>, i32 -> vector<8x256xf32>
    %c19 = arith.constant 19 : index
    %c0_64 = arith.constant 0 : index
    %c0_65 = arith.constant 0 : index
    %138 = vector.load %arg12[%c19, %c0_64, %c0_65] : memref<50x8x256xf32, #tpu.memory_space<vmem>>, vector<1x8x256xf32>
    %139 = vector.shape_cast %138 : vector<1x8x256xf32> to vector<8x256xf32>
    %140 = arith.mulf %139, %137 : vector<8x256xf32>
    %141 = arith.addf %136, %140 : vector<8x256xf32>
    %c14_i32 = arith.constant 14 : i32
    %142 = tpu.dynamic_rotate %43 by %c14_i32 dim 1 : vector<8x256xf32>, i32 -> vector<8x256xf32>
    %c20 = arith.constant 20 : index
    %c0_66 = arith.constant 0 : index
    %c0_67 = arith.constant 0 : index
    %143 = vector.load %arg12[%c20, %c0_66, %c0_67] : memref<50x8x256xf32, #tpu.memory_space<vmem>>, vector<1x8x256xf32>
    %144 = vector.shape_cast %143 : vector<1x8x256xf32> to vector<8x256xf32>
    %145 = arith.mulf %144, %142 : vector<8x256xf32>
    %146 = arith.addf %141, %145 : vector<8x256xf32>
    %c13_i32 = arith.constant 13 : i32
    %147 = tpu.dynamic_rotate %43 by %c13_i32 dim 1 : vector<8x256xf32>, i32 -> vector<8x256xf32>
    %c21 = arith.constant 21 : index
    %c0_68 = arith.constant 0 : index
    %c0_69 = arith.constant 0 : index
    %148 = vector.load %arg12[%c21, %c0_68, %c0_69] : memref<50x8x256xf32, #tpu.memory_space<vmem>>, vector<1x8x256xf32>
    %149 = vector.shape_cast %148 : vector<1x8x256xf32> to vector<8x256xf32>
    %150 = arith.mulf %149, %147 : vector<8x256xf32>
    %151 = arith.addf %146, %150 : vector<8x256xf32>
    %c3_i32 = arith.constant 3 : i32
    %152 = tpu.dynamic_rotate %43 by %c3_i32 dim 1 : vector<8x256xf32>, i32 -> vector<8x256xf32>
    %c22 = arith.constant 22 : index
    %c0_70 = arith.constant 0 : index
    %c0_71 = arith.constant 0 : index
    %153 = vector.load %arg12[%c22, %c0_70, %c0_71] : memref<50x8x256xf32, #tpu.memory_space<vmem>>, vector<1x8x256xf32>
    %154 = vector.shape_cast %153 : vector<1x8x256xf32> to vector<8x256xf32>
    %155 = arith.mulf %154, %152 : vector<8x256xf32>
    %156 = arith.addf %151, %155 : vector<8x256xf32>
    %c2_i32 = arith.constant 2 : i32
    %157 = tpu.dynamic_rotate %43 by %c2_i32 dim 1 : vector<8x256xf32>, i32 -> vector<8x256xf32>
    %c23 = arith.constant 23 : index
    %c0_72 = arith.constant 0 : index
    %c0_73 = arith.constant 0 : index
    %158 = vector.load %arg12[%c23, %c0_72, %c0_73] : memref<50x8x256xf32, #tpu.memory_space<vmem>>, vector<1x8x256xf32>
    %159 = vector.shape_cast %158 : vector<1x8x256xf32> to vector<8x256xf32>
    %160 = arith.mulf %159, %157 : vector<8x256xf32>
    %161 = arith.addf %156, %160 : vector<8x256xf32>
    %c1_i32 = arith.constant 1 : i32
    %162 = tpu.dynamic_rotate %43 by %c1_i32 dim 1 : vector<8x256xf32>, i32 -> vector<8x256xf32>
    %c24 = arith.constant 24 : index
    %c0_74 = arith.constant 0 : index
    %c0_75 = arith.constant 0 : index
    %163 = vector.load %arg12[%c24, %c0_74, %c0_75] : memref<50x8x256xf32, #tpu.memory_space<vmem>>, vector<1x8x256xf32>
    %164 = vector.shape_cast %163 : vector<1x8x256xf32> to vector<8x256xf32>
    %165 = arith.mulf %164, %162 : vector<8x256xf32>
    %166 = arith.addf %161, %165 : vector<8x256xf32>
    %c25 = arith.constant 25 : index
    %c0_76 = arith.constant 0 : index
    %c0_77 = arith.constant 0 : index
    %167 = vector.load %arg12[%c25, %c0_76, %c0_77] : memref<50x8x256xf32, #tpu.memory_space<vmem>>, vector<1x8x256xf32>
    %168 = vector.shape_cast %167 : vector<1x8x256xf32> to vector<8x256xf32>
    %169 = arith.mulf %168, %43 : vector<8x256xf32>
    %170 = arith.addf %166, %169 : vector<8x256xf32>
    %c255_i32 = arith.constant 255 : i32
    %171 = tpu.dynamic_rotate %43 by %c255_i32 dim 1 : vector<8x256xf32>, i32 -> vector<8x256xf32>
    %c26 = arith.constant 26 : index
    %c0_78 = arith.constant 0 : index
    %c0_79 = arith.constant 0 : index
    %172 = vector.load %arg12[%c26, %c0_78, %c0_79] : memref<50x8x256xf32, #tpu.memory_space<vmem>>, vector<1x8x256xf32>
    %173 = vector.shape_cast %172 : vector<1x8x256xf32> to vector<8x256xf32>
    %174 = arith.mulf %173, %171 : vector<8x256xf32>
    %175 = arith.addf %170, %174 : vector<8x256xf32>
    %c254_i32 = arith.constant 254 : i32
    %176 = tpu.dynamic_rotate %43 by %c254_i32 dim 1 : vector<8x256xf32>, i32 -> vector<8x256xf32>
    %c27 = arith.constant 27 : index
    %c0_80 = arith.constant 0 : index
    %c0_81 = arith.constant 0 : index
    %177 = vector.load %arg12[%c27, %c0_80, %c0_81] : memref<50x8x256xf32, #tpu.memory_space<vmem>>, vector<1x8x256xf32>
    %178 = vector.shape_cast %177 : vector<1x8x256xf32> to vector<8x256xf32>
    %179 = arith.mulf %178, %176 : vector<8x256xf32>
    %180 = arith.addf %175, %179 : vector<8x256xf32>
    %c253_i32 = arith.constant 253 : i32
    %181 = tpu.dynamic_rotate %43 by %c253_i32 dim 1 : vector<8x256xf32>, i32 -> vector<8x256xf32>
    %c28 = arith.constant 28 : index
    %c0_82 = arith.constant 0 : index
    %c0_83 = arith.constant 0 : index
    %182 = vector.load %arg12[%c28, %c0_82, %c0_83] : memref<50x8x256xf32, #tpu.memory_space<vmem>>, vector<1x8x256xf32>
    %183 = vector.shape_cast %182 : vector<1x8x256xf32> to vector<8x256xf32>
    %184 = arith.mulf %183, %181 : vector<8x256xf32>
    %185 = arith.addf %180, %184 : vector<8x256xf32>
    %c243_i32 = arith.constant 243 : i32
    %186 = tpu.dynamic_rotate %43 by %c243_i32 dim 1 : vector<8x256xf32>, i32 -> vector<8x256xf32>
    %c29 = arith.constant 29 : index
    %c0_84 = arith.constant 0 : index
    %c0_85 = arith.constant 0 : index
    %187 = vector.load %arg12[%c29, %c0_84, %c0_85] : memref<50x8x256xf32, #tpu.memory_space<vmem>>, vector<1x8x256xf32>
    %188 = vector.shape_cast %187 : vector<1x8x256xf32> to vector<8x256xf32>
    %189 = arith.mulf %188, %186 : vector<8x256xf32>
    %190 = arith.addf %185, %189 : vector<8x256xf32>
    %c242_i32 = arith.constant 242 : i32
    %191 = tpu.dynamic_rotate %43 by %c242_i32 dim 1 : vector<8x256xf32>, i32 -> vector<8x256xf32>
    %c30 = arith.constant 30 : index
    %c0_86 = arith.constant 0 : index
    %c0_87 = arith.constant 0 : index
    %192 = vector.load %arg12[%c30, %c0_86, %c0_87] : memref<50x8x256xf32, #tpu.memory_space<vmem>>, vector<1x8x256xf32>
    %193 = vector.shape_cast %192 : vector<1x8x256xf32> to vector<8x256xf32>
    %194 = arith.mulf %193, %191 : vector<8x256xf32>
    %195 = arith.addf %190, %194 : vector<8x256xf32>
    %c241_i32 = arith.constant 241 : i32
    %196 = tpu.dynamic_rotate %43 by %c241_i32 dim 1 : vector<8x256xf32>, i32 -> vector<8x256xf32>
    %c31 = arith.constant 31 : index
    %c0_88 = arith.constant 0 : index
    %c0_89 = arith.constant 0 : index
    %197 = vector.load %arg12[%c31, %c0_88, %c0_89] : memref<50x8x256xf32, #tpu.memory_space<vmem>>, vector<1x8x256xf32>
    %198 = vector.shape_cast %197 : vector<1x8x256xf32> to vector<8x256xf32>
    %199 = arith.mulf %198, %196 : vector<8x256xf32>
    %200 = arith.addf %195, %199 : vector<8x256xf32>
    %c240_i32 = arith.constant 240 : i32
    %201 = tpu.dynamic_rotate %43 by %c240_i32 dim 1 : vector<8x256xf32>, i32 -> vector<8x256xf32>
    %c32 = arith.constant 32 : index
    %c0_90 = arith.constant 0 : index
    %c0_91 = arith.constant 0 : index
    %202 = vector.load %arg12[%c32, %c0_90, %c0_91] : memref<50x8x256xf32, #tpu.memory_space<vmem>>, vector<1x8x256xf32>
    %203 = vector.shape_cast %202 : vector<1x8x256xf32> to vector<8x256xf32>
    %204 = arith.mulf %203, %201 : vector<8x256xf32>
    %205 = arith.addf %200, %204 : vector<8x256xf32>
    %c239_i32 = arith.constant 239 : i32
    %206 = tpu.dynamic_rotate %43 by %c239_i32 dim 1 : vector<8x256xf32>, i32 -> vector<8x256xf32>
    %c33 = arith.constant 33 : index
    %c0_92 = arith.constant 0 : index
    %c0_93 = arith.constant 0 : index
    %207 = vector.load %arg12[%c33, %c0_92, %c0_93] : memref<50x8x256xf32, #tpu.memory_space<vmem>>, vector<1x8x256xf32>
    %208 = vector.shape_cast %207 : vector<1x8x256xf32> to vector<8x256xf32>
    %209 = arith.mulf %208, %206 : vector<8x256xf32>
    %210 = arith.addf %205, %209 : vector<8x256xf32>
    %c238_i32 = arith.constant 238 : i32
    %211 = tpu.dynamic_rotate %43 by %c238_i32 dim 1 : vector<8x256xf32>, i32 -> vector<8x256xf32>
    %c34 = arith.constant 34 : index
    %c0_94 = arith.constant 0 : index
    %c0_95 = arith.constant 0 : index
    %212 = vector.load %arg12[%c34, %c0_94, %c0_95] : memref<50x8x256xf32, #tpu.memory_space<vmem>>, vector<1x8x256xf32>
    %213 = vector.shape_cast %212 : vector<1x8x256xf32> to vector<8x256xf32>
    %214 = arith.mulf %213, %211 : vector<8x256xf32>
    %215 = arith.addf %210, %214 : vector<8x256xf32>
    %c237_i32 = arith.constant 237 : i32
    %216 = tpu.dynamic_rotate %43 by %c237_i32 dim 1 : vector<8x256xf32>, i32 -> vector<8x256xf32>
    %c35 = arith.constant 35 : index
    %c0_96 = arith.constant 0 : index
    %c0_97 = arith.constant 0 : index
    %217 = vector.load %arg12[%c35, %c0_96, %c0_97] : memref<50x8x256xf32, #tpu.memory_space<vmem>>, vector<1x8x256xf32>
    %218 = vector.shape_cast %217 : vector<1x8x256xf32> to vector<8x256xf32>
    %219 = arith.mulf %218, %216 : vector<8x256xf32>
    %220 = arith.addf %215, %219 : vector<8x256xf32>
    %c227_i32 = arith.constant 227 : i32
    %221 = tpu.dynamic_rotate %43 by %c227_i32 dim 1 : vector<8x256xf32>, i32 -> vector<8x256xf32>
    %c36 = arith.constant 36 : index
    %c0_98 = arith.constant 0 : index
    %c0_99 = arith.constant 0 : index
    %222 = vector.load %arg12[%c36, %c0_98, %c0_99] : memref<50x8x256xf32, #tpu.memory_space<vmem>>, vector<1x8x256xf32>
    %223 = vector.shape_cast %222 : vector<1x8x256xf32> to vector<8x256xf32>
    %224 = arith.mulf %223, %221 : vector<8x256xf32>
    %225 = arith.addf %220, %224 : vector<8x256xf32>
    %c226_i32 = arith.constant 226 : i32
    %226 = tpu.dynamic_rotate %43 by %c226_i32 dim 1 : vector<8x256xf32>, i32 -> vector<8x256xf32>
    %c37 = arith.constant 37 : index
    %c0_100 = arith.constant 0 : index
    %c0_101 = arith.constant 0 : index
    %227 = vector.load %arg12[%c37, %c0_100, %c0_101] : memref<50x8x256xf32, #tpu.memory_space<vmem>>, vector<1x8x256xf32>
    %228 = vector.shape_cast %227 : vector<1x8x256xf32> to vector<8x256xf32>
    %229 = arith.mulf %228, %226 : vector<8x256xf32>
    %230 = arith.addf %225, %229 : vector<8x256xf32>
    %c225_i32 = arith.constant 225 : i32
    %231 = tpu.dynamic_rotate %43 by %c225_i32 dim 1 : vector<8x256xf32>, i32 -> vector<8x256xf32>
    %c38 = arith.constant 38 : index
    %c0_102 = arith.constant 0 : index
    %c0_103 = arith.constant 0 : index
    %232 = vector.load %arg12[%c38, %c0_102, %c0_103] : memref<50x8x256xf32, #tpu.memory_space<vmem>>, vector<1x8x256xf32>
    %233 = vector.shape_cast %232 : vector<1x8x256xf32> to vector<8x256xf32>
    %234 = arith.mulf %233, %231 : vector<8x256xf32>
    %235 = arith.addf %230, %234 : vector<8x256xf32>
    %c224_i32 = arith.constant 224 : i32
    %236 = tpu.dynamic_rotate %43 by %c224_i32 dim 1 : vector<8x256xf32>, i32 -> vector<8x256xf32>
    %c39 = arith.constant 39 : index
    %c0_104 = arith.constant 0 : index
    %c0_105 = arith.constant 0 : index
    %237 = vector.load %arg12[%c39, %c0_104, %c0_105] : memref<50x8x256xf32, #tpu.memory_space<vmem>>, vector<1x8x256xf32>
    %238 = vector.shape_cast %237 : vector<1x8x256xf32> to vector<8x256xf32>
    %239 = arith.mulf %238, %236 : vector<8x256xf32>
    %240 = arith.addf %235, %239 : vector<8x256xf32>
    %c223_i32 = arith.constant 223 : i32
    %241 = tpu.dynamic_rotate %43 by %c223_i32 dim 1 : vector<8x256xf32>, i32 -> vector<8x256xf32>
    %c40 = arith.constant 40 : index
    %c0_106 = arith.constant 0 : index
    %c0_107 = arith.constant 0 : index
    %242 = vector.load %arg12[%c40, %c0_106, %c0_107] : memref<50x8x256xf32, #tpu.memory_space<vmem>>, vector<1x8x256xf32>
    %243 = vector.shape_cast %242 : vector<1x8x256xf32> to vector<8x256xf32>
    %244 = arith.mulf %243, %241 : vector<8x256xf32>
    %245 = arith.addf %240, %244 : vector<8x256xf32>
    %c222_i32 = arith.constant 222 : i32
    %246 = tpu.dynamic_rotate %43 by %c222_i32 dim 1 : vector<8x256xf32>, i32 -> vector<8x256xf32>
    %c41 = arith.constant 41 : index
    %c0_108 = arith.constant 0 : index
    %c0_109 = arith.constant 0 : index
    %247 = vector.load %arg12[%c41, %c0_108, %c0_109] : memref<50x8x256xf32, #tpu.memory_space<vmem>>, vector<1x8x256xf32>
    %248 = vector.shape_cast %247 : vector<1x8x256xf32> to vector<8x256xf32>
    %249 = arith.mulf %248, %246 : vector<8x256xf32>
    %250 = arith.addf %245, %249 : vector<8x256xf32>
    %c221_i32 = arith.constant 221 : i32
    %251 = tpu.dynamic_rotate %43 by %c221_i32 dim 1 : vector<8x256xf32>, i32 -> vector<8x256xf32>
    %c42 = arith.constant 42 : index
    %c0_110 = arith.constant 0 : index
    %c0_111 = arith.constant 0 : index
    %252 = vector.load %arg12[%c42, %c0_110, %c0_111] : memref<50x8x256xf32, #tpu.memory_space<vmem>>, vector<1x8x256xf32>
    %253 = vector.shape_cast %252 : vector<1x8x256xf32> to vector<8x256xf32>
    %254 = arith.mulf %253, %251 : vector<8x256xf32>
    %255 = arith.addf %250, %254 : vector<8x256xf32>
    %c211_i32 = arith.constant 211 : i32
    %256 = tpu.dynamic_rotate %43 by %c211_i32 dim 1 : vector<8x256xf32>, i32 -> vector<8x256xf32>
    %c43 = arith.constant 43 : index
    %c0_112 = arith.constant 0 : index
    %c0_113 = arith.constant 0 : index
    %257 = vector.load %arg12[%c43, %c0_112, %c0_113] : memref<50x8x256xf32, #tpu.memory_space<vmem>>, vector<1x8x256xf32>
    %258 = vector.shape_cast %257 : vector<1x8x256xf32> to vector<8x256xf32>
    %259 = arith.mulf %258, %256 : vector<8x256xf32>
    %260 = arith.addf %255, %259 : vector<8x256xf32>
    %c210_i32 = arith.constant 210 : i32
    %261 = tpu.dynamic_rotate %43 by %c210_i32 dim 1 : vector<8x256xf32>, i32 -> vector<8x256xf32>
    %c44 = arith.constant 44 : index
    %c0_114 = arith.constant 0 : index
    %c0_115 = arith.constant 0 : index
    %262 = vector.load %arg12[%c44, %c0_114, %c0_115] : memref<50x8x256xf32, #tpu.memory_space<vmem>>, vector<1x8x256xf32>
    %263 = vector.shape_cast %262 : vector<1x8x256xf32> to vector<8x256xf32>
    %264 = arith.mulf %263, %261 : vector<8x256xf32>
    %265 = arith.addf %260, %264 : vector<8x256xf32>
    %c209_i32 = arith.constant 209 : i32
    %266 = tpu.dynamic_rotate %43 by %c209_i32 dim 1 : vector<8x256xf32>, i32 -> vector<8x256xf32>
    %c45 = arith.constant 45 : index
    %c0_116 = arith.constant 0 : index
    %c0_117 = arith.constant 0 : index
    %267 = vector.load %arg12[%c45, %c0_116, %c0_117] : memref<50x8x256xf32, #tpu.memory_space<vmem>>, vector<1x8x256xf32>
    %268 = vector.shape_cast %267 : vector<1x8x256xf32> to vector<8x256xf32>
    %269 = arith.mulf %268, %266 : vector<8x256xf32>
    %270 = arith.addf %265, %269 : vector<8x256xf32>
    %c208_i32 = arith.constant 208 : i32
    %271 = tpu.dynamic_rotate %43 by %c208_i32 dim 1 : vector<8x256xf32>, i32 -> vector<8x256xf32>
    %c46 = arith.constant 46 : index
    %c0_118 = arith.constant 0 : index
    %c0_119 = arith.constant 0 : index
    %272 = vector.load %arg12[%c46, %c0_118, %c0_119] : memref<50x8x256xf32, #tpu.memory_space<vmem>>, vector<1x8x256xf32>
    %273 = vector.shape_cast %272 : vector<1x8x256xf32> to vector<8x256xf32>
    %274 = arith.mulf %273, %271 : vector<8x256xf32>
    %275 = arith.addf %270, %274 : vector<8x256xf32>
    %c207_i32 = arith.constant 207 : i32
    %276 = tpu.dynamic_rotate %43 by %c207_i32 dim 1 : vector<8x256xf32>, i32 -> vector<8x256xf32>
    %c47 = arith.constant 47 : index
    %c0_120 = arith.constant 0 : index
    %c0_121 = arith.constant 0 : index
    %277 = vector.load %arg12[%c47, %c0_120, %c0_121] : memref<50x8x256xf32, #tpu.memory_space<vmem>>, vector<1x8x256xf32>
    %278 = vector.shape_cast %277 : vector<1x8x256xf32> to vector<8x256xf32>
    %279 = arith.mulf %278, %276 : vector<8x256xf32>
    %280 = arith.addf %275, %279 : vector<8x256xf32>
    %c206_i32 = arith.constant 206 : i32
    %281 = tpu.dynamic_rotate %43 by %c206_i32 dim 1 : vector<8x256xf32>, i32 -> vector<8x256xf32>
    %c48 = arith.constant 48 : index
    %c0_122 = arith.constant 0 : index
    %c0_123 = arith.constant 0 : index
    %282 = vector.load %arg12[%c48, %c0_122, %c0_123] : memref<50x8x256xf32, #tpu.memory_space<vmem>>, vector<1x8x256xf32>
    %283 = vector.shape_cast %282 : vector<1x8x256xf32> to vector<8x256xf32>
    %284 = arith.mulf %283, %281 : vector<8x256xf32>
    %285 = arith.addf %280, %284 : vector<8x256xf32>
    %c205_i32 = arith.constant 205 : i32
    %286 = tpu.dynamic_rotate %43 by %c205_i32 dim 1 : vector<8x256xf32>, i32 -> vector<8x256xf32>
    %c49 = arith.constant 49 : index
    %c0_124 = arith.constant 0 : index
    %c0_125 = arith.constant 0 : index
    %287 = vector.load %arg12[%c49, %c0_124, %c0_125] : memref<50x8x256xf32, #tpu.memory_space<vmem>>, vector<1x8x256xf32>
    %288 = vector.shape_cast %287 : vector<1x8x256xf32> to vector<8x256xf32>
    %289 = arith.mulf %288, %286 : vector<8x256xf32>
    %290 = arith.addf %285, %289 : vector<8x256xf32>
    %291 = arith.addf %43, %290 : vector<8x256xf32>
    %cst_126 = arith.constant 5.000000e-01 : f32
    %292 = vector.broadcast %cst_126 : f32 to vector<8x256xf32>
    %293 = arith.mulf %292, %291 : vector<8x256xf32>
    %cst_127 = arith.constant 0.707106769 : f32
    %294 = vector.broadcast %cst_127 : f32 to vector<8x256xf32>
    %295 = arith.mulf %291, %294 : vector<8x256xf32>
    %296 = math.erf %295 : vector<8x256xf32>
    %cst_128 = arith.constant 1.000000e+00 : f32
    %297 = vector.broadcast %cst_128 : f32 to vector<8x256xf32>
    %298 = arith.addf %297, %296 : vector<8x256xf32>
    %299 = arith.mulf %293, %298 : vector<8x256xf32>
    %c0_129 = arith.constant 0 : index
    %c0_130 = arith.constant 0 : index
    %300 = vector.load %arg6[%c0_129, %c0_130] : memref<8x8xf32, #tpu.memory_space<vmem>>, vector<8x8xf32>
    %cst_131 = arith.constant dense<0.000000e+00> : vector<8x256xf32>
    %301 = tpu.matmul %300, %299, %cst_131 {dimension_numbers = #tpu.dot_dimension_numbers<[1], [0], [0], [1], [0, 0, 1, 1], [], []>} : vector<8x8xf32>, vector<8x256xf32>, vector<8x256xf32> -> vector<8x256xf32>
    %c0_132 = arith.constant 0 : index
    %c0_133 = arith.constant 0 : index
    %302 = vector.load %arg7[%c0_132, %c0_133] : memref<8x1xf32, #tpu.memory_space<vmem>>, vector<8x1xf32>
    %303 = vector.broadcast %302 : vector<8x1xf32> to vector<8x256xf32>
    %304 = arith.addf %301, %303 : vector<8x256xf32>
    %305 = arith.addf %299, %304 : vector<8x256xf32>
    %cst_134 = arith.constant 5.000000e-01 : f32
    %306 = vector.broadcast %cst_134 : f32 to vector<8x256xf32>
    %307 = arith.mulf %306, %305 : vector<8x256xf32>
    %cst_135 = arith.constant 0.707106769 : f32
    %308 = vector.broadcast %cst_135 : f32 to vector<8x256xf32>
    %309 = arith.mulf %305, %308 : vector<8x256xf32>
    %310 = math.erf %309 : vector<8x256xf32>
    %cst_136 = arith.constant 1.000000e+00 : f32
    %311 = vector.broadcast %cst_136 : f32 to vector<8x256xf32>
    %312 = arith.addf %311, %310 : vector<8x256xf32>
    %313 = arith.mulf %307, %312 : vector<8x256xf32>
    %c0_137 = arith.constant 0 : index
    %c0_138 = arith.constant 0 : index
    %314 = vector.load %arg8[%c0_137, %c0_138] : memref<16x8xf32, #tpu.memory_space<vmem>>, vector<16x8xf32>
    %cst_139 = arith.constant dense<0.000000e+00> : vector<16x256xf32>
    %315 = tpu.matmul %314, %313, %cst_139 {dimension_numbers = #tpu.dot_dimension_numbers<[1], [0], [0], [1], [0, 0, 1, 1], [], []>} : vector<16x8xf32>, vector<8x256xf32>, vector<16x256xf32> -> vector<16x256xf32>
    %c0_140 = arith.constant 0 : index
    %c0_141 = arith.constant 0 : index
    %316 = vector.load %arg9[%c0_140, %c0_141] : memref<16x1xf32, #tpu.memory_space<vmem>>, vector<16x1xf32>
    %317 = vector.broadcast %316 : vector<16x1xf32> to vector<16x256xf32>
    %318 = arith.addf %315, %317 : vector<16x256xf32>
    %cst_142 = arith.constant 5.000000e-01 : f32
    %319 = vector.broadcast %cst_142 : f32 to vector<16x256xf32>
    %320 = arith.mulf %319, %318 : vector<16x256xf32>
    %cst_143 = arith.constant 0.707106769 : f32
    %321 = vector.broadcast %cst_143 : f32 to vector<16x256xf32>
    %322 = arith.mulf %318, %321 : vector<16x256xf32>
    %323 = math.erf %322 : vector<16x256xf32>
    %cst_144 = arith.constant 1.000000e+00 : f32
    %324 = vector.broadcast %cst_144 : f32 to vector<16x256xf32>
    %325 = arith.addf %324, %323 : vector<16x256xf32>
    %326 = arith.mulf %320, %325 : vector<16x256xf32>
    %c0_145 = arith.constant 0 : index
    %c0_146 = arith.constant 0 : index
    %327 = vector.load %arg10[%c0_145, %c0_146] : memref<16x16xf32, #tpu.memory_space<vmem>>, vector<16x16xf32>
    %cst_147 = arith.constant dense<0.000000e+00> : vector<16x256xf32>
    %328 = tpu.matmul %327, %326, %cst_147 {dimension_numbers = #tpu.dot_dimension_numbers<[1], [0], [0], [1], [0, 0, 1, 1], [], []>} : vector<16x16xf32>, vector<16x256xf32>, vector<16x256xf32> -> vector<16x256xf32>
    %c0_148 = arith.constant 0 : index
    %c0_149 = arith.constant 0 : index
    %329 = vector.load %arg11[%c0_148, %c0_149] : memref<16x1xf32, #tpu.memory_space<vmem>>, vector<16x1xf32>
    %330 = vector.broadcast %329 : vector<16x1xf32> to vector<16x256xf32>
    %331 = arith.addf %328, %330 : vector<16x256xf32>
    %c0_150 = arith.constant 0 : index
    %c0_151 = arith.constant 0 : index
    %332 = vector.load %arg14[%c0_150, %c0_151] : memref<16x256xf32, #tpu.memory_space<vmem>>, vector<16x256xf32>
    tpu.vector_store %arg14[%c0_150, %c0_151], %331 {strides = array<i32>} : memref<16x256xf32, #tpu.memory_space<vmem>>, vector<16x256xf32>,
    return
  }
  func.func @transform_0(%arg0: i32) -> (i32, i32) {
    %c0_i32 = arith.constant 0 : i32
    %c0_i32_0 = arith.constant 0 : i32
    %c0_i32_1 = arith.constant 0 : i32
    return %c0_i32, %c0_i32_0 : i32, i32
  }
  func.func @transform_1(%arg0: i32) -> (i32, i32) {
    %c0_i32 = arith.constant 0 : i32
    %c0_i32_0 = arith.constant 0 : i32
    %c0_i32_1 = arith.constant 0 : i32
    return %c0_i32, %c0_i32_0 : i32, i32
  }
  func.func @transform_2(%arg0: i32) -> (i32, i32) {
    %c0_i32 = arith.constant 0 : i32
    %c0_i32_0 = arith.constant 0 : i32
    %c0_i32_1 = arith.constant 0 : i32
    return %c0_i32, %c0_i32_0 : i32, i32
  }
  func.func @transform_3(%arg0: i32) -> (i32, i32) {
    %c0_i32 = arith.constant 0 : i32
    %c0_i32_0 = arith.constant 0 : i32
    %c0_i32_1 = arith.constant 0 : i32
    return %c0_i32, %c0_i32_0 : i32, i32
  }
  func.func @transform_4(%arg0: i32) -> (i32, i32) {
    %c0_i32 = arith.constant 0 : i32
    %c0_i32_0 = arith.constant 0 : i32
    %c0_i32_1 = arith.constant 0 : i32
    return %c0_i32, %c0_i32_0 : i32, i32
  }
  func.func @transform_5(%arg0: i32) -> (i32, i32) {
    %c0_i32 = arith.constant 0 : i32
    %c0_i32_0 = arith.constant 0 : i32
    %c0_i32_1 = arith.constant 0 : i32
    return %c0_i32, %c0_i32_0 : i32, i32
  }
  func.func @transform_6(%arg0: i32) -> (i32, i32) {
    %c0_i32 = arith.constant 0 : i32
    %c0_i32_0 = arith.constant 0 : i32
    %c0_i32_1 = arith.constant 0 : i32
    return %c0_i32, %c0_i32_0 : i32, i32
  }
  func.func @transform_7(%arg0: i32) -> (i32, i32) {
    %c0_i32 = arith.constant 0 : i32
    %c0_i32_0 = arith.constant 0 : i32
    %c0_i32_1 = arith.constant 0 : i32
    return %c0_i32, %c0_i32_0 : i32, i32
  }
  func.func @transform_8(%arg0: i32) -> (i32, i32) {
    %c0_i32 = arith.constant 0 : i32
    %c0_i32_0 = arith.constant 0 : i32
    %c0_i32_1 = arith.constant 0 : i32
    return %c0_i32, %c0_i32_0 : i32, i32
  }
  func.func @transform_9(%arg0: i32) -> (i32, i32) {
    %c0_i32 = arith.constant 0 : i32
    %c0_i32_0 = arith.constant 0 : i32
    %c0_i32_1 = arith.constant 0 : i32
    return %c0_i32, %c0_i32_0 : i32, i32
  }
  func.func @transform_10(%arg0: i32) -> (i32, i32) {
    %c0_i32 = arith.constant 0 : i32
    %c0_i32_0 = arith.constant 0 : i32
    %c0_i32_1 = arith.constant 0 : i32
    return %c0_i32, %c0_i32_0 : i32, i32
  }
  func.func @transform_11(%arg0: i32) -> (i32, i32, i32) {
    %c0_i32 = arith.constant 0 : i32
    %c0_i32_0 = arith.constant 0 : i32
    %c0_i32_1 = arith.constant 0 : i32
    %c0_i32_2 = arith.constant 0 : i32
    return %c0_i32, %c0_i32_0, %c0_i32_1 : i32, i32, i32
  }
  func.func @transform_12(%arg0: i32) -> (i32, i32, i32) {
    %c0_i32 = arith.constant 0 : i32
    %c0_i32_0 = arith.constant 0 : i32
    %c0_i32_1 = arith.constant 0 : i32
    %c0_i32_2 = arith.constant 0 : i32
    return %c0_i32, %c0_i32_0, %c0_i32_1 : i32, i32, i32
  }
  func.func @transform_13(%arg0: i32) -> (i32, i32) {
    %c0_i32 = arith.constant 0 : i32
    %c0_i32_0 = arith.constant 0 : i32
    %c0_i32_1 = arith.constant 0 : i32
    return %c0_i32, %c0_i32_0 : i32, i32
  }
}

</mosaic_0001>

<bundles_post_ra>
// kernel: tpu_custom_call.1
= control target key start
LH: loop header
LB: loop body
LE: loop exit
PB: predicated region body
PF: predicated region fallthrough
CT: control target
= control target key end

     0   :  { %18 = vsyncpa [#allocation3], 0  ;;  %s2140_s0 = inlined_call_operand.vmem [shape: f32[8,256], index: 0, kind: input, shape index: {}]   ;;  %s2141_s1 = inlined_call_operand.vmem [shape: f32[16,8], index: 1, kind: input, shape index: {}]   ;;  %s2142_s2 = inlined_call_operand.vmem [shape: f32[16,1], index: 2, kind: input, shape index: {}]   ;;  %s2143_s3 = inlined_call_operand.vmem [shape: f32[8,16], index: 3, kind: input, shape index: {}]   ;;  %s2144_s4 = inlined_call_operand.vmem [shape: f32[8,1], index: 4, kind: input, shape index: {}]   ;;  %s2145_s5 = inlined_call_operand.vmem [shape: f32[8,8], index: 5, kind: input, shape index: {}]   ;;  %s2146_s6 = inlined_call_operand.vmem [shape: f32[8,1], index: 6, kind: input, shape index: {}]   ;;  %s2147_s7 = inlined_call_operand.vmem [shape: f32[16,8], index: 7, kind: input, shape index: {}]   ;;  %s2148_s8 = inlined_call_operand.vmem [shape: f32[16,1], index: 8, kind: input, shape index: {}]   ;;  %s2149_s9 = inlined_call_operand.vmem [shape: f32[16,16], index: 9, kind: input, shape index: {}]   ;;  %s2150_s10 = inlined_call_operand.vmem [shape: f32[16,1], index: 10, kind: input, shape index: {}]   ;;  %s2151_s11 = inlined_call_operand.hbm [shape: f32[50,8,256], index: 11, kind: input, shape index: {}]   ;;  %s2152_s12 = inlined_call_operand.vmem [shape: f32[2,8,1], index: 12, kind: input, shape index: {}]   ;;  %s2153_s13 = inlined_call_operand.hbm [shape: f32[16,256], index: 13, kind: output, shape index: {}]  }
   0x1   :  { %19 = vsyncpa [#allocation4], 0  ;;  %s1477_s25 = smov [#allocation2]   ;;  %s1429_s29 = scalar_lea.hbm %s2151_s11, 12800 }
   0x2   :  { %s47_s26 = sshll.u32 %s1477_s25, 4  ;;  %p1430_p0 = scmp.ne.s32.totalorder %s2151_s11, %s1429_s29  ;;  %s48_s26 = int_to_ptr.vmem [resolvable:$true] %s47_s26 }
   0x3   :  { %p1433_p1 = scmp.lt.u32.totalorder %s1429_s29, %s2151_s11 }
   0x5   :  { %p1435_p2 = pnand %p1433_p1, %p1430_p0 }
   0x7   :  { %1438 = shalt.err (!%p1435_p2)
}
   0x8   :  { %s1439_s17 = scalar_lea.vmem %s48_s26, 12800  ;;  %p1444_p4 = scmp.lt.s32.totalorder %s48_s26, %s48_s26 }
   0x9   :  { %p1440_p3 = scmp.ne.s32.totalorder %s48_s26, %s1439_s17  ;;  %p1445_p5 = scmp.lt.s32.totalorder %s1439_s17, %s1439_s17 }
   0xb   :  { %p1446_p6 = por %p1445_p5, %p1444_p4 }
   0xd   :  { %p1447_p7 = pnand %p1446_p6, %p1440_p3 }
   0xf   :  { %1450 = shalt.err (!%p1447_p7)
}
  0x10   :  { %s1478_s18 = smov 256   ;;  %s1479_s19 = smov 16  }
  0x11   :  { %53 = dma.hbm_to_vmem [thread:$0]  %s2151_s11, 12800, %s48_s26, [#allocation3], %s1478_s18, %s1478_s18, %s1479_s19  }
  0x12   :  { %1473 = dma.done.wait [#allocation3], 12800  }
  0x13   :  { %1474 = vsyncadd [#allocation3], 4294954496  ;;  %v1480_v0 = vmov 0.0   ;;  %v1481_v1 = vmov 0   ;;  %v1620_v2 = vld [vmem:[%s2140_s0 + $0x8] sm:$0xff]  ;;  %v1625_v3 = vld [vmem:[%s2140_s0] sm:$0xff] }
  0x14   :  { %146 = vmatprep.mubr.f32.mxu0 %v1480_v0  ;;  %1395 = vset.pattern.permute.xlu0 %v1481_v1  ;;  %v61_v4 = vld [vmem:[%s2141_s1] sm:$0xff]  ;;  %vm75_vm0 = vcmask 64512   ;;  %v64_v6 = vld [vmem:[%s2142_s2 + $0x8] sm:$0xff]  ;;  %vm186_vm1 = vcmask 130048   ;;  %s1484_s22 = smov 49   ;;  %s1485_s23 = smov 48  }
  0x15   :  { %254 = vmatprep.mubr.f32.mxu1 %v1480_v0  ;;  %1396 = vset.pattern.permute.xlu1 %v1481_v1  ;;  %v63_v5 = vld [vmem:[%s2142_s2] sm:$0xff]  ;;  %v62_v7 = vld [vmem:[%s2141_s1 + $0x8] sm:$0xff]  ;;  %s1486_s24 = smov 47   ;;  %s1487_s25 = smov 46  }
  0x16   :  { %82 = vmatprep.subr.mxu0 %v1620_v2  ;;  %67 = vperm.xlu0 %1395, %v63_v5   ;;  %v1328_v8 = vld [vmem:[%s2152_s12 + $0x8] sm:$0xff]  ;;  %v180_v9 = vld [vmem:[%s2144_s4] sm:$0xff]  ;;  %s1488_s11 = smov 45   ;;  %s1489_s26 = smov 35  }
  0x17   :  { %83 = vmatpush1.msra.mxu0 %v1625_v3  ;;  %183 = vperm.xlu1 %1396, %v180_v9   ;;  %v273_v10 = vld [vmem:[%s2152_s12] sm:$0xff]  ;;  %v275_v61 = vld [vmem:[#allocation2 + $0x8] sm:$0xff]  ;;  %s1483_s12 = smov 50   ;;  %s1490_s27 = smov 34  }
  0x18   :  { %1325 = vmatmul.mubr.msk.f32.vlgmr.msra.gmra.mrb[0].mxu0 %vm75_vm0, %v61_v4  ;;  %v179_v43 = vld [vmem:[%s2143_s3] sm:$0xff]  ;;  %s1482_s3 = smov 51   ;;  %s1491_s28 = smov 33  }
  0x19   :  { %152 = vmatprep.mubr.f32.mxu0 %v1480_v0  ;;  %v274_v57 = vld [vmem:[#allocation2] sm:$0xff]  ;;  %s1492_s29 = smov 32   ;;  %s1493_s30 = smov 31  }
  0x1a   :  { %72 = vperm.xlu0 %1395, %v64_v6   ;;  %s1494_s0 = smov 30   ;;  %s1495_s14 = smov 29  }
  0x1b   :  { %280 = vperm.xlu1 %1396, %v273_v10   ;;  %s1496_s15 = smov 19   ;;  %s1497_s16 = smov 18  }
  0x1c   :  { %1326 = vmatmul.mubr.msk.f32.gmra.mrb[2].mxu0 %vm75_vm0, %v62_v7  ;;  %s1498_s17 = smov 17   ;;  %s1499_s20 = smov 15  }
  0x1d   :  { %1174 = vmatprep.mubr.f32.mxu0 %v1480_v0  ;;  %s1500_s2 = smov 14   ;;  %s1501_s21 = smov 13  }
  0x1e   :  { %315 = vperm.xlu0 %1395, %v1328_v8   ;;  %s1502_s1 = smov 3   ;;  %s1503_s4 = smov 2  }
  0x95   :  { %v68_v11 = vpop.permute.xlu0 %67 }
  0x96   :  { %v184_v44 = vpop.permute.xlu1 %183 }
  0x99   :  { %v73_v17 = vpop.permute.xlu0 %72 }
  0x9a   :  { %v281_v1 = vpop.permute.xlu1 %280 }
  0xeb   :  { %v148_v12 = vpop.f32.mrb[0].mxu0 }
  0xec   :  { %v149_v13 = vadd.f32 %v148_v12, %v68_v11  ;;  %v150_v14 = vpop.f32.mrb[1].mxu0 }
  0xed   :  { %v151_v15 = vadd.f32 %v150_v14, %v68_v11 }
  0xee   :  { %v163_v16 = vmul.f32 0.70710677, %v149_v13  ;;  %v159_v31 = vmul.f32 0.5, %v149_v13 }
  0xef   :  { %v164_v18 = vmul.f32 0.70710677, %v151_v15  ;;  %v154_v19 = vpop.f32.mrb[2].mxu0  ;;  %v160_v34 = vmul.f32 0.5, %v151_v15 }
  0xf0   :  { %1397 = verf.f32 %v163_v16  ;;  %v155_v20 = vadd.f32 %v154_v19, %v73_v17  ;;  %v156_v21 = vpop.f32.mrb[3].mxu0  ;;  %v316_v19 = vpop.permute.xlu0 %315 }
  0xf1   :  { %1399 = verf.f32 %v164_v18  ;;  %v157_v22 = vadd.f32 %v156_v21, %v73_v17  ;;  %v303_v17 = vlaneseq }
  0xf2   :  { %v165_v23 = vmul.f32 0.70710677, %v155_v20  ;;  %v161_v32 = vmul.f32 0.5, %v155_v20 }
  0xf3   :  { %v166_v24 = vmul.f32 0.70710677, %v157_v22  ;;  %v162_v35 = vmul.f32 0.5, %v157_v22  ;;  %v1723_v18 = vand.u32 127, %v303_v17  ;;  %v309_v22 = vld [vmem:[#allocation2 + $0x10] sm:$0xff] }
  0xf4   :  { %1401 = verf.f32 %v165_v23  ;;  %v310_v23 = vld [vmem:[#allocation2 + $0x18] sm:$0xff] }
  0xf5   :  { %1403 = verf.f32 %v166_v24  ;;  %vm305_vm2 = vcmp.lt.s32.totalorder %v1723_v18, 51  ;;  %vm324_vm3 = vcmp.lt.s32.totalorder %v1723_v18, 50  ;;  %vm338_vm4 = vcmp.lt.s32.totalorder %v1723_v18, 49 }
  0xf6   :  { %vm352_vm5 = vcmp.lt.s32.totalorder %v1723_v18, 48  ;;  %vm366_vm6 = vcmp.lt.s32.totalorder %v1723_v18, 47  ;;  %vm380_vm7 = vcmp.lt.s32.totalorder %v1723_v18, 46  ;;  %vm394_vm8 = vcmp.lt.s32.totalorder %v1723_v18, 45 }
  0xf7   :  { %vm408_vm9 = vcmp.lt.s32.totalorder %v1723_v18, 35  ;;  %vm422_vm10 = vcmp.lt.s32.totalorder %v1723_v18, 34  ;;  %vm436_vm11 = vcmp.lt.s32.totalorder %v1723_v18, 33  ;;  %vm450_vm12 = vcmp.lt.s32.totalorder %v1723_v18, 32 }
  0xf8   :  { %vm464_vm13 = vcmp.lt.s32.totalorder %v1723_v18, 31  ;;  %vm478_vm14 = vcmp.lt.s32.totalorder %v1723_v18, 30  ;;  %vm492_vm15 = vcmp.lt.s32.totalorder %v1723_v18, 29 }
  0xfa   :  { %v1398_v25 = vpop.eup %1397 }
  0xfb   :  { %v1400_v26 = vpop.eup %1399  ;;  %v171_v27 = vadd.f32 1.0, %v1398_v25 }
  0xfc   :  { %v172_v29 = vadd.f32 1.0, %v1400_v26 }
  0xfd   :  { %v175_v37 = vmul.f32 %v171_v27, %v159_v31  ;;  %v328_v27 = vld [vmem:[#allocation2 + $0x20] sm:$0xff] }
  0xfe   :  { %v1402_v28 = vpop.eup %1401  ;;  %v176_v39 = vmul.f32 %v172_v29, %v160_v34 }
  0xff   :  { %v1404_v30 = vpop.eup %1403  ;;  %v173_v33 = vadd.f32 1.0, %v1402_v28  ;;  %v329_v28 = vld [vmem:[#allocation2 + $0x28] sm:$0xff] }
 0x100   :  { %v174_v36 = vadd.f32 1.0, %v1404_v30 }
 0x101   :  { %v177_v38 = vmul.f32 %v173_v33, %v161_v32 }
 0x102   :  { %v178_v40 = vmul.f32 %v174_v36, %v162_v35 }
 0x103   :  { %v1336_v41 = vpack.c.bf16 %v177_v38, %v175_v37  ;;  %v342_v37 = vld [vmem:[#allocation2 + $0x30] sm:$0xff]  ;;  %v343_v38 = vld [vmem:[#allocation2 + $0x38] sm:$0xff] }
 0x104   :  { %v1334_v42 = vpack.c.bf16 %v178_v40, %v176_v39 }
 0x106   :  { %1335 = vmatprep.subr.bf16.mxu1 %v1334_v42 }
 0x107   :  { %1337 = vmatpush1.bf16.msra.mxu1 %v1336_v41 }
 0x10a   :  { %1327 = vmatmul.mubr.msk.f32.vlgmr.msra.gmra.mrb[0].mxu1 %vm186_vm1, %v179_v43 }
 0x10b   :  { %1071 = vmatprep.mubr.f32.mxu1 %v1480_v0 }
 0x1dd   :  { %v256_v45 = vpop.f32.mrb[0].mxu1 }
 0x1de   :  { %v257_v46 = vadd.f32 %v256_v45, %v184_v44  ;;  %v258_v47 = vpop.f32.mrb[1].mxu1 }
 0x1df   :  { %v259_v48 = vadd.f32 %v258_v47, %v184_v44 }
 0x1e0   :  { %v261_v49 = vadd.f32 %v257_v46, %v1625_v3 }
 0x1e1   :  { %v262_v50 = vadd.f32 %v259_v48, %v1620_v2 }
 0x1e2   :  { %v265_v51 = vmul.f32 0.70710677, %v261_v49  ;;  %v263_v55 = vmul.f32 0.5, %v261_v49  ;;  %v356_v49 = vld [vmem:[#allocation2 + $0x40] sm:$0xff] }
 0x1e3   :  { %v266_v52 = vmul.f32 0.70710677, %v262_v50  ;;  %v264_v58 = vmul.f32 0.5, %v262_v50  ;;  %v357_v50 = vld [vmem:[#allocation2 + $0x48] sm:$0xff] }
 0x1e4   :  { %1405 = verf.f32 %v265_v51 }
 0x1e5   :  { %1407 = verf.f32 %v266_v52 }
 0x1ee   :  { %v1406_v53 = vpop.eup %1405 }
 0x1ef   :  { %v1408_v54 = vpop.eup %1407  ;;  %v269_v56 = vadd.f32 1.0, %v1406_v53 }
 0x1f0   :  { %v270_v59 = vadd.f32 1.0, %v1408_v54 }
 0x1f1   :  { %v271_v60 = vmul.f32 %v269_v56, %v263_v55 }
 0x1f2   :  { %v272_v62 = vmul.f32 %v270_v59, %v264_v58  ;;  %v370_v59 = vld [vmem:[#allocation2 + $0x50] sm:$0xff] }
 0x1f3   :  { %v276_v63 = vmul.f32 %v274_v57, %v271_v60 }
 0x1f4   :  { %v277_v4 = vmul.f32 %v275_v61, %v272_v62 }
 0x1f5   :  { %v283_v3 = vadd.f32 %v281_v1, %v276_v63 }
 0x1f6   :  { %v284_v5 = vadd.f32 %v281_v1, %v277_v4 }
 0x1f7   :  { %v285_v2 = vadd.f32 %v283_v3, %v271_v60  ;;  %v371_v60 = vld [vmem:[#allocation2 + $0x58] sm:$0xff] }
 0x1f8   :  { %v286_v6 = vadd.f32 %v284_v5, %v272_v62 }
 0x1f9   :  { %v289_v7 = vmul.f32 0.70710677, %v285_v2  ;;  %v287_v11 = vmul.f32 0.5, %v285_v2 }
 0x1fa   :  { %v290_v8 = vmul.f32 0.70710677, %v286_v6  ;;  %v288_v13 = vmul.f32 0.5, %v286_v6  ;;  %v384_v6 = vld [vmem:[#allocation2 + $0x60] sm:$0xff] }
 0x1fb   :  { %1409 = verf.f32 %v289_v7  ;;  %v385_v7 = vld [vmem:[#allocation2 + $0x68] sm:$0xff] }
 0x1fc   :  { %1411 = verf.f32 %v290_v8 }
 0x205   :  { %v1410_v9 = vpop.eup %1409 }
 0x206   :  { %v1412_v10 = vpop.eup %1411  ;;  %v293_v12 = vadd.f32 1.0, %v1410_v9 }
 0x207   :  { %v294_v14 = vadd.f32 1.0, %v1412_v10 }
 0x208   :  { %v1661_v15 = vmul.f32 %v293_v12, %v287_v11 }
 0x209   :  { %v1663_v16 = vmul.f32 %v294_v14, %v288_v13 }
 0x20a   :  { %299 = vrot.lane.b32.xlu1 %v1661_v15, %s1482_s3 }
 0x20b   :  { %301 = vrot.lane.b32.xlu0 %v1663_v16, %s1482_s3  ;;  %s1504_s3 = smov 1  }
 0x20e   :  { %320 = vrot.lane.b32.xlu1 %v1661_v15, %s1483_s12 }
 0x20f   :  { %322 = vrot.lane.b32.xlu0 %v1663_v16, %s1483_s12  ;;  %s1505_s12 = smov 127  }
 0x212   :  { %334 = vrot.lane.b32.xlu1 %v1661_v15, %s1484_s22 }
 0x213   :  { %336 = vrot.lane.b32.xlu0 %v1663_v16, %s1484_s22  ;;  %s1506_s22 = smov 126  }
 0x216   :  { %348 = vrot.lane.b32.xlu1 %v1661_v15, %s1485_s23 }
 0x217   :  { %350 = vrot.lane.b32.xlu0 %v1663_v16, %s1485_s23  ;;  %s1507_s23 = smov 125  }
 0x21a   :  { %362 = vrot.lane.b32.xlu1 %v1661_v15, %s1486_s24 }
 0x21b   :  { %364 = vrot.lane.b32.xlu0 %v1663_v16, %s1486_s24  ;;  %s1508_s24 = smov 115  }
 0x21e   :  { %376 = vrot.lane.b32.xlu1 %v1661_v15, %s1487_s25 }
 0x21f   :  { %378 = vrot.lane.b32.xlu0 %v1663_v16, %s1487_s25  ;;  %s1509_s25 = smov 114  }
 0x222   :  { %390 = vrot.lane.b32.xlu1 %v1661_v15, %s1488_s11 }
 0x223   :  { %392 = vrot.lane.b32.xlu0 %v1663_v16, %s1488_s11  ;;  %s1510_s11 = smov 113  }
 0x226   :  { %404 = vrot.lane.b32.xlu1 %v1661_v15, %s1489_s26 }
 0x227   :  { %406 = vrot.lane.b32.xlu0 %v1663_v16, %s1489_s26  ;;  %s1511_s26 = smov 112  }
 0x22a   :  { %418 = vrot.lane.b32.xlu1 %v1661_v15, %s1490_s27 }
 0x22b   :  { %420 = vrot.lane.b32.xlu0 %v1663_v16, %s1490_s27  ;;  %s1512_s27 = smov 111  }
 0x22e   :  { %432 = vrot.lane.b32.xlu1 %v1661_v15, %s1491_s28 }
 0x22f   :  { %434 = vrot.lane.b32.xlu0 %v1663_v16, %s1491_s28  ;;  %s1513_s28 = smov 110  }
 0x232   :  { %446 = vrot.lane.b32.xlu1 %v1661_v15, %s1492_s29 }
 0x233   :  { %448 = vrot.lane.b32.xlu0 %v1663_v16, %s1492_s29  ;;  %s1514_s29 = smov 109  }
 0x236   :  { %460 = vrot.lane.b32.xlu1 %v1661_v15, %s1493_s30 }
 0x237   :  { %462 = vrot.lane.b32.xlu0 %v1663_v16, %s1493_s30  ;;  %s1515_s30 = smov 99  }
 0x23a   :  { %474 = vrot.lane.b32.xlu1 %v1661_v15, %s1494_s0 }
 0x23b   :  { %476 = vrot.lane.b32.xlu0 %v1663_v16, %s1494_s0  ;;  %s1516_s0 = smov 98  }
 0x23e   :  { %488 = vrot.lane.b32.xlu1 %v1661_v15, %s1495_s14 }
 0x23f   :  { %490 = vrot.lane.b32.xlu0 %v1663_v16, %s1495_s14  ;;  %s1517_s14 = smov 97  }
 0x242   :  { %502 = vrot.lane.b32.xlu1 %v1661_v15, %s1496_s15 }
 0x243   :  { %504 = vrot.lane.b32.xlu0 %v1663_v16, %s1496_s15  ;;  %s1518_s15 = smov 96  }
 0x246   :  { %516 = vrot.lane.b32.xlu1 %v1661_v15, %s1497_s16 }
 0x247   :  { %518 = vrot.lane.b32.xlu0 %v1663_v16, %s1497_s16  ;;  %s1519_s16 = smov 95  }
 0x24a   :  { %530 = vrot.lane.b32.xlu1 %v1661_v15, %s1498_s17 }
 0x24b   :  { %532 = vrot.lane.b32.xlu0 %v1663_v16, %s1498_s17  ;;  %s1520_s17 = smov 94  }
 0x24e   :  { %544 = vrot.lane.b32.xlu1 %v1661_v15, %s1479_s19 }
 0x24f   :  { %546 = vrot.lane.b32.xlu0 %v1663_v16, %s1479_s19 }
 0x252   :  { %558 = vrot.lane.b32.xlu1 %v1661_v15, %s1499_s20 }
 0x253   :  { %560 = vrot.lane.b32.xlu0 %v1663_v16, %s1499_s20  ;;  %s1521_s20 = smov 93  }
 0x256   :  { %572 = vrot.lane.b32.xlu1 %v1661_v15, %s1500_s2 }
 0x257   :  { %574 = vrot.lane.b32.xlu0 %v1663_v16, %s1500_s2  ;;  %s1522_s2 = smov 83  }
 0x25a   :  { %586 = vrot.lane.b32.xlu1 %v1661_v15, %s1501_s21 }
 0x25b   :  { %588 = vrot.lane.b32.xlu0 %v1663_v16, %s1501_s21  ;;  %s1523_s21 = smov 82  }
 0x25e   :  { %600 = vrot.lane.b32.xlu1 %v1661_v15, %s1502_s1 }
 0x25f   :  { %602 = vrot.lane.b32.xlu0 %v1663_v16, %s1502_s1  ;;  %s1524_s1 = smov 81  }
 0x262   :  { %614 = vrot.lane.b32.xlu1 %v1661_v15, %s1503_s4 }
 0x263   :  { %616 = vrot.lane.b32.xlu0 %v1663_v16, %s1503_s4  ;;  %s1525_s4 = smov 80  }
 0x266   :  { %628 = vrot.lane.b32.xlu1 %v1661_v15, %s1504_s3 }
 0x267   :  { %630 = vrot.lane.b32.xlu0 %v1663_v16, %s1504_s3  ;;  %s1526_s3 = smov 79  }
 0x26a   :  { %649 = vrot.lane.b32.xlu1 %v1661_v15, %s1505_s12 }
 0x26b   :  { %651 = vrot.lane.b32.xlu0 %v1663_v16, %s1505_s12  ;;  %s1527_s12 = smov 78  }
 0x26e   :  { %663 = vrot.lane.b32.xlu1 %v1661_v15, %s1506_s22 }
 0x26f   :  { %665 = vrot.lane.b32.xlu0 %v1663_v16, %s1506_s22  ;;  %s1528_s22 = smov 77  }
 0x272   :  { %677 = vrot.lane.b32.xlu1 %v1661_v15, %s1507_s23 }
 0x273   :  { %679 = vrot.lane.b32.xlu0 %v1663_v16, %s1507_s23 }
 0x276   :  { %691 = vrot.lane.b32.xlu1 %v1661_v15, %s1508_s24 }
 0x277   :  { %693 = vrot.lane.b32.xlu0 %v1663_v16, %s1508_s24 }
 0x27a   :  { %705 = vrot.lane.b32.xlu1 %v1661_v15, %s1509_s25 }
 0x27b   :  { %707 = vrot.lane.b32.xlu0 %v1663_v16, %s1509_s25 }
 0x27c   :  { %v300_v20 = vpop.permute.xlu1 %299 }
 0x27d   :  { %v302_v21 = vpop.permute.xlu0 %301 }
 0x27e   :  { %v306_v24 = vsel %vm305_vm2, %v300_v20, %v302_v21  ;;  %v307_v25 = vsel %vm305_vm2, %v302_v21, %v300_v20  ;;  %719 = vrot.lane.b32.xlu1 %v1661_v15, %s1510_s11  ;;  %v399_v20 = vld [vmem:[#allocation2 + $0x78] sm:$0xff]  ;;  %vm506_vm2 = vcmp.lt.s32.totalorder %v1723_v18, 19 }
 0x27f   :  { %721 = vrot.lane.b32.xlu0 %v1663_v16, %s1510_s11  ;;  %v311_v29 = vmul.f32 %v309_v22, %v307_v25  ;;  %v312_v30 = vmul.f32 %v310_v23, %v306_v24 }
 0x280   :  { %v321_v26 = vpop.permute.xlu1 %320 }
 0x281   :  { %v323_v31 = vpop.permute.xlu0 %322  ;;  %v318_v39 = vadd.f32 %v316_v19, %v311_v29  ;;  %v319_v40 = vadd.f32 %v316_v19, %v312_v30  ;;  %v398_v19 = vld [vmem:[#allocation2 + $0x70] sm:$0xff]  ;;  %v412_v29 = vld [vmem:[#allocation2 + $0x80] sm:$0xff]  ;;  %v413_v30 = vld [vmem:[#allocation2 + $0x88] sm:$0xff] }
 0x282   :  { %v325_v32 = vsel %vm324_vm3, %v321_v26, %v323_v31  ;;  %v326_v33 = vsel %vm324_vm3, %v323_v31, %v321_v26  ;;  %733 = vrot.lane.b32.xlu1 %v1661_v15, %s1511_s26  ;;  %vm520_vm3 = vcmp.lt.s32.totalorder %v1723_v18, 18 }
 0x283   :  { %v330_v34 = vmul.f32 %v328_v27, %v326_v33  ;;  %v331_v35 = vmul.f32 %v329_v28, %v325_v32  ;;  %735 = vrot.lane.b32.xlu0 %v1663_v16, %s1511_s26 }
 0x284   :  { %v335_v36 = vpop.permute.xlu1 %334 }
 0x285   :  { %v337_v41 = vpop.permute.xlu0 %336  ;;  %v332_v44 = vadd.f32 %v330_v34, %v318_v39  ;;  %v333_v45 = vadd.f32 %v331_v35, %v319_v40  ;;  %v426_v39 = vld [vmem:[#allocation2 + $0x90] sm:$0xff]  ;;  %v427_v40 = vld [vmem:[#allocation2 + $0x98] sm:$0xff] }
 0x286   :  { %v339_v42 = vsel %vm338_vm4, %v335_v36, %v337_v41  ;;  %v340_v43 = vsel %vm338_vm4, %v337_v41, %v335_v36  ;;  %747 = vrot.lane.b32.xlu1 %v1661_v15, %s1512_s27  ;;  %vm534_vm4 = vcmp.lt.s32.totalorder %v1723_v18, 17 }
 0x287   :  { %v344_v46 = vmul.f32 %v342_v37, %v340_v43  ;;  %v345_v47 = vmul.f32 %v343_v38, %v339_v42  ;;  %749 = vrot.lane.b32.xlu0 %v1663_v16, %s1512_s27 }
 0x288   :  { %v349_v48 = vpop.permute.xlu1 %348 }
 0x289   :  { %v346_v51 = vadd.f32 %v344_v46, %v332_v44  ;;  %v347_v52 = vadd.f32 %v345_v47, %v333_v45  ;;  %v351_v53 = vpop.permute.xlu0 %350 }
 0x28a   :  { %v353_v54 = vsel %vm352_vm5, %v349_v48, %v351_v53  ;;  %v354_v55 = vsel %vm352_vm5, %v351_v53, %v349_v48  ;;  %761 = vrot.lane.b32.xlu1 %v1661_v15, %s1513_s28  ;;  %vm548_vm5 = vcmp.lt.s32.totalorder %v1723_v18, 16 }
 0x28b   :  { %v358_v56 = vmul.f32 %v356_v49, %v354_v55  ;;  %v359_v57 = vmul.f32 %v357_v50, %v353_v54  ;;  %763 = vrot.lane.b32.xlu0 %v1663_v16, %s1513_s28  ;;  %v440_v49 = vld [vmem:[#allocation2 + $0xa0] sm:$0xff]  ;;  %v441_v50 = vld [vmem:[#allocation2 + $0xa8] sm:$0xff] }
 0x28c   :  { %v363_v58 = vpop.permute.xlu1 %362 }
 0x28d   :  { %v360_v61 = vadd.f32 %v358_v56, %v346_v51  ;;  %v361_v62 = vadd.f32 %v359_v57, %v347_v52  ;;  %v365_v63 = vpop.permute.xlu0 %364 }
 0x28e   :  { %v367_v1 = vsel %vm366_vm6, %v363_v58, %v365_v63  ;;  %v368_v4 = vsel %vm366_vm6, %v365_v63, %v363_v58  ;;  %775 = vrot.lane.b32.xlu1 %v1661_v15, %s1514_s29  ;;  %vm562_vm6 = vcmp.lt.s32.totalorder %v1723_v18, 15 }
 0x28f   :  { %v372_v3 = vmul.f32 %v370_v59, %v368_v4  ;;  %v373_v5 = vmul.f32 %v371_v60, %v367_v1  ;;  %777 = vrot.lane.b32.xlu0 %v1663_v16, %s1514_s29  ;;  %v454_v59 = vld [vmem:[#allocation2 + $0xb0] sm:$0xff]  ;;  %v455_v60 = vld [vmem:[#allocation2 + $0xb8] sm:$0xff] }
 0x290   :  { %v377_v2 = vpop.permute.xlu1 %376 }
 0x291   :  { %v374_v8 = vadd.f32 %v372_v3, %v360_v61  ;;  %v375_v9 = vadd.f32 %v373_v5, %v361_v62  ;;  %v379_v10 = vpop.permute.xlu0 %378 }
 0x292   :  { %v381_v11 = vsel %vm380_vm7, %v377_v2, %v379_v10  ;;  %v382_v12 = vsel %vm380_vm7, %v379_v10, %v377_v2  ;;  %789 = vrot.lane.b32.xlu1 %v1661_v15, %s1515_s30  ;;  %vm576_vm7 = vcmp.lt.s32.totalorder %v1723_v18, 14 }
 0x293   :  { %v386_v13 = vmul.f32 %v384_v6, %v382_v12  ;;  %v387_v14 = vmul.f32 %v385_v7, %v381_v11  ;;  %791 = vrot.lane.b32.xlu0 %v1663_v16, %s1515_s30  ;;  %v468_v6 = vld [vmem:[#allocation2 + $0xc0] sm:$0xff]  ;;  %v469_v7 = vld [vmem:[#allocation2 + $0xc8] sm:$0xff] }
 0x294   :  { %v391_v17 = vpop.permute.xlu1 %390 }
 0x295   :  { %v388_v21 = vadd.f32 %v386_v13, %v374_v8  ;;  %v389_v22 = vadd.f32 %v387_v14, %v375_v9  ;;  %v393_v23 = vpop.permute.xlu0 %392 }
 0x296   :  { %v395_v24 = vsel %vm394_vm8, %v391_v17, %v393_v23  ;;  %v396_v25 = vsel %vm394_vm8, %v393_v23, %v391_v17  ;;  %803 = vrot.lane.b32.xlu1 %v1661_v15, %s1516_s0  ;;  %vm590_vm8 = vcmp.lt.s32.totalorder %v1723_v18, 13 }
 0x297   :  { %v400_v26 = vmul.f32 %v398_v19, %v396_v25  ;;  %v401_v27 = vmul.f32 %v399_v20, %v395_v24  ;;  %805 = vrot.lane.b32.xlu0 %v1663_v16, %s1516_s0  ;;  %v482_v19 = vld [vmem:[#allocation2 + $0xd0] sm:$0xff]  ;;  %v483_v20 = vld [vmem:[#allocation2 + $0xd8] sm:$0xff] }
 0x298   :  { %v405_v28 = vpop.permute.xlu1 %404 }
 0x299   :  { %v402_v31 = vadd.f32 %v400_v26, %v388_v21  ;;  %v403_v32 = vadd.f32 %v401_v27, %v389_v22  ;;  %v407_v33 = vpop.permute.xlu0 %406 }
 0x29a   :  { %v409_v34 = vsel %vm408_vm9, %v405_v28, %v407_v33  ;;  %v410_v35 = vsel %vm408_vm9, %v407_v33, %v405_v28  ;;  %817 = vrot.lane.b32.xlu1 %v1661_v15, %s1517_s14  ;;  %vm604_vm9 = vcmp.lt.s32.totalorder %v1723_v18, 3 }
 0x29b   :  { %v414_v36 = vmul.f32 %v412_v29, %v410_v35  ;;  %v415_v37 = vmul.f32 %v413_v30, %v409_v34  ;;  %819 = vrot.lane.b32.xlu0 %v1663_v16, %s1517_s14  ;;  %v496_v29 = vld [vmem:[#allocation2 + $0xe0] sm:$0xff]  ;;  %v497_v30 = vld [vmem:[#allocation2 + $0xe8] sm:$0xff] }
 0x29c   :  { %v419_v38 = vpop.permute.xlu1 %418 }
 0x29d   :  { %v416_v41 = vadd.f32 %v414_v36, %v402_v31  ;;  %v417_v42 = vadd.f32 %v415_v37, %v403_v32  ;;  %v421_v43 = vpop.permute.xlu0 %420 }
 0x29e   :  { %v423_v44 = vsel %vm422_vm10, %v419_v38, %v421_v43  ;;  %v424_v45 = vsel %vm422_vm10, %v421_v43, %v419_v38  ;;  %831 = vrot.lane.b32.xlu1 %v1661_v15, %s1518_s15  ;;  %vm618_vm10 = vcmp.lt.s32.totalorder %v1723_v18, 2 }
 0x29f   :  { %v428_v46 = vmul.f32 %v426_v39, %v424_v45  ;;  %v429_v47 = vmul.f32 %v427_v40, %v423_v44  ;;  %833 = vrot.lane.b32.xlu0 %v1663_v16, %s1518_s15  ;;  %v510_v39 = vld [vmem:[#allocation2 + $0xf0] sm:$0xff]  ;;  %v511_v40 = vld [vmem:[#allocation2 + $0xf8] sm:$0xff] }
 0x2a0   :  { %v433_v48 = vpop.permute.xlu1 %432 }
 0x2a1   :  { %v430_v51 = vadd.f32 %v428_v46, %v416_v41  ;;  %v431_v52 = vadd.f32 %v429_v47, %v417_v42  ;;  %v435_v53 = vpop.permute.xlu0 %434 }
 0x2a2   :  { %v437_v54 = vsel %vm436_vm11, %v433_v48, %v435_v53  ;;  %v438_v55 = vsel %vm436_vm11, %v435_v53, %v433_v48  ;;  %845 = vrot.lane.b32.xlu1 %v1661_v15, %s1519_s16  ;;  %vm632_vm11 = vcmp.lt.s32.totalorder %v1723_v18, 1 }
 0x2a3   :  { %v442_v56 = vmul.f32 %v440_v49, %v438_v55  ;;  %v443_v57 = vmul.f32 %v441_v50, %v437_v54  ;;  %847 = vrot.lane.b32.xlu0 %v1663_v16, %s1519_s16 }
 0x2a4   :  { %v447_v58 = vpop.permute.xlu1 %446 }
 0x2a5   :  { %v444_v61 = vadd.f32 %v442_v56, %v430_v51  ;;  %v445_v62 = vadd.f32 %v443_v57, %v431_v52  ;;  %v449_v63 = vpop.permute.xlu0 %448 }
 0x2a6   :  { %v451_v1 = vsel %vm450_vm12, %v447_v58, %v449_v63  ;;  %v452_v4 = vsel %vm450_vm12, %v449_v63, %v447_v58  ;;  %859 = vrot.lane.b32.xlu1 %v1661_v15, %s1520_s17  ;;  %v998_v58 = vld [vmem:[%s2146_s6] sm:$0xff]  ;;  %vm653_vm12 = vcmp.lt.s32.totalorder %v1723_v18, 127 }
 0x2a7   :  { %v456_v3 = vmul.f32 %v454_v59, %v452_v4  ;;  %v457_v5 = vmul.f32 %v455_v60, %v451_v1  ;;  %861 = vrot.lane.b32.xlu0 %v1663_v16, %s1520_s17  ;;  %v1092_v60 = vld [vmem:[%s2148_s8] sm:$0xff] }
 0x2a8   :  { %v461_v2 = vpop.permute.xlu1 %460  ;;  %v1209_v1 = vld [vmem:[%s2150_s10] sm:$0xff] }
 0x2a9   :  { %v458_v8 = vadd.f32 %v456_v3, %v444_v61  ;;  %v459_v9 = vadd.f32 %v457_v5, %v445_v62  ;;  %v463_v10 = vpop.permute.xlu0 %462  ;;  %v1093_v62 = vld [vmem:[%s2148_s8 + $0x8] sm:$0xff] }
 0x2aa   :  { %v465_v11 = vsel %vm464_vm13, %v461_v2, %v463_v10  ;;  %v466_v12 = vsel %vm464_vm13, %v463_v10, %v461_v2  ;;  %873 = vrot.lane.b32.xlu1 %v1661_v15, %s1521_s20  ;;  %v1210_v3 = vld [vmem:[%s2150_s10 + $0x8] sm:$0xff]  ;;  %vm667_vm13 = vcmp.lt.s32.totalorder %v1723_v18, 126 }
 0x2ab   :  { %v470_v13 = vmul.f32 %v468_v6, %v466_v12  ;;  %v471_v14 = vmul.f32 %v469_v7, %v465_v11  ;;  %875 = vrot.lane.b32.xlu0 %v1663_v16, %s1521_s20 }
 0x2ac   :  { %v475_v17 = vpop.permute.xlu1 %474 }
 0x2ad   :  { %v472_v21 = vadd.f32 %v470_v13, %v458_v8  ;;  %v473_v22 = vadd.f32 %v471_v14, %v459_v9  ;;  %v477_v23 = vpop.permute.xlu0 %476 }
 0x2ae   :  { %v479_v24 = vsel %vm478_vm14, %v475_v17, %v477_v23  ;;  %v480_v25 = vsel %vm478_vm14, %v477_v23, %v475_v17  ;;  %887 = vrot.lane.b32.xlu1 %v1661_v15, %s1522_s2  ;;  %v524_v23 = vld [vmem:[#allocation2 + $0x100] sm:$0xff]  ;;  %vm681_vm14 = vcmp.lt.s32.totalorder %v1723_v18, 125 }
 0x2af   :  { %v484_v26 = vmul.f32 %v482_v19, %v480_v25  ;;  %v485_v27 = vmul.f32 %v483_v20, %v479_v24  ;;  %889 = vrot.lane.b32.xlu0 %v1663_v16, %s1522_s2  ;;  %v525_v24 = vld [vmem:[#allocation2 + $0x108] sm:$0xff]  ;;  %s1529_s2 = smov [#allocation5]  }
 0x2b0   :  { %v489_v28 = vpop.permute.xlu1 %488 }
 0x2b1   :  { %v486_v31 = vadd.f32 %v484_v26, %v472_v21  ;;  %v487_v32 = vadd.f32 %v485_v27, %v473_v22  ;;  %v491_v33 = vpop.permute.xlu0 %490 }
 0x2b2   :  { %v493_v34 = vsel %vm492_vm15, %v489_v28, %v491_v33  ;;  %v494_v35 = vsel %vm492_vm15, %v491_v33, %v489_v28  ;;  %901 = vrot.lane.b32.xlu1 %v1661_v15, %s1523_s21  ;;  %vm695_vm15 = vcmp.lt.s32.totalorder %v1723_v18, 115 }
 0x2b3   :  { %v498_v36 = vmul.f32 %v496_v29, %v494_v35  ;;  %v499_v37 = vmul.f32 %v497_v30, %v493_v34  ;;  %903 = vrot.lane.b32.xlu0 %v1663_v16, %s1523_s21  ;;  %v538_v29 = vld [vmem:[#allocation2 + $0x110] sm:$0xff]  ;;  %v539_v30 = vld [vmem:[#allocation2 + $0x118] sm:$0xff]  ;;  %v552_v35 = vld [vmem:[#allocation2 + $0x120] sm:$0xff]  ;;  %s1313_s21 = sshll.u32 %s1529_s2, 4  ;;  %s1314_s21 = int_to_ptr.vmem [resolvable:$true] %s1313_s21 }
 0x2b4   :  { %v503_v38 = vpop.permute.xlu1 %502  ;;  %p1456_p9 = scmp.lt.s32.totalorder %s1314_s21, %s1314_s21 }
 0x2b5   :  { %v500_v41 = vadd.f32 %v498_v36, %v486_v31  ;;  %v501_v42 = vadd.f32 %v499_v37, %v487_v32  ;;  %v505_v43 = vpop.permute.xlu0 %504  ;;  %v553_v36 = vld [vmem:[#allocation2 + $0x128] sm:$0xff] }
 0x2b6   :  { %v507_v44 = vsel %vm506_vm2, %v503_v38, %v505_v43  ;;  %v508_v45 = vsel %vm506_vm2, %v505_v43, %v503_v38  ;;  %915 = vrot.lane.b32.xlu1 %v1661_v15, %s1524_s1  ;;  %v566_v43 = vld [vmem:[#allocation2 + $0x130] sm:$0xff]  ;;  %vm709_vm2 = vcmp.lt.s32.totalorder %v1723_v18, 114 }
 0x2b7   :  { %v512_v46 = vmul.f32 %v510_v39, %v508_v45  ;;  %v513_v47 = vmul.f32 %v511_v40, %v507_v44  ;;  %917 = vrot.lane.b32.xlu0 %v1663_v16, %s1524_s1  ;;  %v567_v44 = vld [vmem:[#allocation2 + $0x138] sm:$0xff] }
 0x2b8   :  { %v517_v48 = vpop.permute.xlu1 %516 }
 0x2b9   :  { %v1772_v49 = vadd.f32 %v512_v46, %v500_v41  ;;  %v1774_v50 = vadd.f32 %v513_v47, %v501_v42  ;;  %v519_v51 = vpop.permute.xlu0 %518 }
 0x2ba   :  { %929 = vrot.lane.b32.xlu1 %v1661_v15, %s1525_s4  ;;  %v521_v25 = vsel %vm520_vm3, %v517_v48, %v519_v51  ;;  %v522_v26 = vsel %vm520_vm3, %v519_v51, %v517_v48  ;;  %vm723_vm3 = vcmp.lt.s32.totalorder %v1723_v18, 113 }
 0x2bb   :  { %931 = vrot.lane.b32.xlu0 %v1663_v16, %s1525_s4  ;;  %v526_v33 = vmul.f32 %v524_v23, %v522_v26  ;;  %v527_v34 = vmul.f32 %v525_v24, %v521_v25 }
 0x2bc   :  { %v531_v52 = vpop.permute.xlu1 %530 }
 0x2bd   :  { %v533_v53 = vpop.permute.xlu0 %532  ;;  %v528_v47 = vadd.f32 %v526_v33, %v1772_v49  ;;  %v529_v48 = vadd.f32 %v527_v34, %v1774_v50  ;;  %v594_v50 = vld [vmem:[#allocation2 + $0x150] sm:$0xff] }
 0x2be   :  { %943 = vrot.lane.b32.xlu1 %v1661_v15, %s1526_s3  ;;  %v535_v31 = vsel %vm534_vm4, %v531_v52, %v533_v53  ;;  %v536_v32 = vsel %vm534_vm4, %v533_v53, %v531_v52  ;;  %v580_v53 = vld [vmem:[#allocation2 + $0x140] sm:$0xff]  ;;  %vm737_vm4 = vcmp.lt.s32.totalorder %v1723_v18, 112 }
 0x2bf   :  { %945 = vrot.lane.b32.xlu0 %v1663_v16, %s1526_s3  ;;  %v540_v40 = vmul.f32 %v538_v29, %v536_v32  ;;  %v541_v41 = vmul.f32 %v539_v30, %v535_v31  ;;  %v608_v29 = vld [vmem:[#allocation2 + $0x160] sm:$0xff]  ;;  %v609_v30 = vld [vmem:[#allocation2 + $0x168] sm:$0xff] }
 0x2c0   :  { %v545_v54 = vpop.permute.xlu1 %544 }
 0x2c1   :  { %v547_v55 = vpop.permute.xlu0 %546 }
 0x2c2   :  { %957 = vrot.lane.b32.xlu1 %v1661_v15, %s1527_s12  ;;  %v549_v37 = vsel %vm548_vm5, %v545_v54, %v547_v55  ;;  %v550_v38 = vsel %vm548_vm5, %v547_v55, %v545_v54  ;;  %v581_v54 = vld [vmem:[#allocation2 + $0x148] sm:$0xff]  ;;  %vm751_vm5 = vcmp.lt.s32.totalorder %v1723_v18, 111 }
 0x2c3   :  { %959 = vrot.lane.b32.xlu0 %v1663_v16, %s1527_s12  ;;  %v554_v51 = vmul.f32 %v552_v35, %v550_v38  ;;  %v555_v52 = vmul.f32 %v553_v36, %v549_v37  ;;  %v622_v37 = vld [vmem:[#allocation2 + $0x170] sm:$0xff]  ;;  %v623_v38 = vld [vmem:[#allocation2 + $0x178] sm:$0xff] }
 0x2c4   :  { %v1782_v56 = vpop.permute.xlu1 %558 }
 0x2c5   :  { %v1784_v57 = vpop.permute.xlu0 %560 }
 0x2c6   :  { %971 = vrot.lane.b32.xlu1 %v1661_v15, %s1528_s22  ;;  %v563_v45 = vsel %vm562_vm6, %v1782_v56, %v1784_v57  ;;  %v564_v46 = vsel %vm562_vm6, %v1784_v57, %v1782_v56  ;;  %v542_v56 = vadd.f32 %v540_v40, %v528_v47  ;;  %v543_v57 = vadd.f32 %v541_v41, %v529_v48 }
 0x2c7   :  { %973 = vrot.lane.b32.xlu0 %v1663_v16, %s1528_s22  ;;  %v569_v49 = vmul.f32 %v567_v44, %v563_v45  ;;  %v636_v45 = vld [vmem:[#allocation2 + $0x180] sm:$0xff]  ;;  %vm765_vm6 = vcmp.lt.s32.totalorder %v1723_v18, 110 }
 0x2c8   :  { %v1791_v59 = vpop.permute.xlu1 %572  ;;  %v557_v24 = vadd.f32 %v555_v52, %v543_v57 }
 0x2c9   :  { %v1796_v61 = vpop.permute.xlu0 %574 }
 0x2ca   :  { %1001 = vperm.xlu1 %1396, %v998_v58   ;;  %v577_v55 = vsel %vm576_vm7, %v1791_v59, %v1796_v61  ;;  %v578_v58 = vsel %vm576_vm7, %v1796_v61, %v1791_v59  ;;  %v556_v61 = vadd.f32 %v554_v51, %v542_v56  ;;  %v571_v33 = vadd.f32 %v569_v49, %v557_v24  ;;  %v658_v24 = vld [vmem:[#allocation2 + $0x1a8] sm:$0xff] }
 0x2cb   :  { %1096 = vperm.xlu0 %1395, %v1092_v60   ;;  %v582_v25 = vmul.f32 %v580_v53, %v578_v58  ;;  %v583_v26 = vmul.f32 %v581_v54, %v577_v55  ;;  %vm779_vm7 = vcmp.lt.s32.totalorder %v1723_v18, 109 }
 0x2cc   :  { %v1801_v63 = vpop.permute.xlu1 %586 }
 0x2cd   :  { %v1806_v4 = vpop.permute.xlu0 %588  ;;  %v585_v41 = vadd.f32 %v583_v26, %v571_v33  ;;  %v672_v33 = vld [vmem:[#allocation2 + $0x1b8] sm:$0xff] }
 0x2ce   :  { %1101 = vperm.xlu1 %1396, %v1093_v62   ;;  %v568_v62 = vmul.f32 %v566_v43, %v564_v46  ;;  %v591_v23 = vsel %vm590_vm8, %v1801_v63, %v1806_v4  ;;  %v592_v59 = vsel %vm590_vm8, %v1806_v4, %v1801_v63  ;;  %v637_v46 = vld [vmem:[#allocation2 + $0x188] sm:$0xff]  ;;  %vm793_vm8 = vcmp.lt.s32.totalorder %v1723_v18, 99 }
 0x2cf   :  { %1213 = vperm.xlu0 %1395, %v1209_v1   ;;  %v596_v34 = vmul.f32 %v594_v50, %v592_v59 }
 0x2d0   :  { %v1811_v5 = vpop.permute.xlu1 %600  ;;  %v570_v4 = vadd.f32 %v568_v62, %v556_v61  ;;  %v657_v61 = vld [vmem:[#allocation2 + $0x1a0] sm:$0xff] }
 0x2d1   :  { %v1813_v2 = vpop.permute.xlu0 %602 }
 0x2d2   :  { %1218 = vperm.xlu1 %1396, %v1210_v3   ;;  %v595_v3 = vld [vmem:[#allocation2 + $0x158] sm:$0xff]  ;;  %v605_v31 = vsel %vm604_vm9, %v1811_v5, %v1813_v2  ;;  %v606_v32 = vsel %vm604_vm9, %v1813_v2, %v1811_v5  ;;  %v584_v2 = vadd.f32 %v582_v25, %v570_v4  ;;  %v671_v4 = vld [vmem:[#allocation2 + $0x1b0] sm:$0xff]  ;;  %vm807_vm9 = vcmp.lt.s32.totalorder %v1723_v18, 98 }
 0x2d3   :  { %v597_v35 = vmul.f32 %v595_v3, %v591_v23  ;;  %v610_v43 = vmul.f32 %v608_v29, %v606_v32  ;;  %v611_v44 = vmul.f32 %v609_v30, %v605_v31 }
 0x2d4   :  { %v1815_v6 = vpop.permute.xlu1 %614  ;;  %v598_v52 = vadd.f32 %v596_v34, %v584_v2 }
 0x2d5   :  { %v1817_v7 = vpop.permute.xlu0 %616 }
 0x2d6   :  { %v619_v40 = vsel %vm618_vm10, %v1815_v6, %v1817_v7  ;;  %v620_v5 = vsel %vm618_vm10, %v1817_v7, %v1815_v6  ;;  %v599_v6 = vadd.f32 %v597_v35, %v585_v41  ;;  %v612_v55 = vadd.f32 %v610_v43, %v598_v52 }
 0x2d7   :  { %v624_v7 = vmul.f32 %v622_v37, %v620_v5  ;;  %v625_v53 = vmul.f32 %v623_v38, %v619_v40  ;;  %v685_v40 = vld [vmem:[#allocation2 + $0x1c0] sm:$0xff]  ;;  %v686_v5 = vld [vmem:[#allocation2 + $0x1c8] sm:$0xff]  ;;  %vm821_vm10 = vcmp.lt.s32.totalorder %v1723_v18, 97 }
 0x2d8   :  { %v1819_v8 = vpop.permute.xlu1 %628  ;;  %v613_v58 = vadd.f32 %v611_v44, %v599_v6 }
 0x2d9   :  { %v1821_v9 = vpop.permute.xlu0 %630  ;;  %v626_v49 = vadd.f32 %v624_v7, %v612_v55  ;;  %v713_v7 = vld [vmem:[#allocation2 + $0x1e0] sm:$0xff] }
 0x2da   :  { %v633_v47 = vsel %vm632_vm11, %v1819_v8, %v1821_v9  ;;  %v634_v48 = vsel %vm632_vm11, %v1821_v9, %v1819_v8  ;;  %v627_v50 = vadd.f32 %v625_v53, %v613_v58  ;;  %v643_v8 = vld [vmem:[#allocation2 + $0x190] sm:$0xff]  ;;  %v644_v9 = vld [vmem:[#allocation2 + $0x198] sm:$0xff]  ;;  %v714_v53 = vld [vmem:[#allocation2 + $0x1e8] sm:$0xff]  ;;  %vm835_vm11 = vcmp.lt.s32.totalorder %v1723_v18, 96 }
 0x2db   :  { %v638_v56 = vmul.f32 %v636_v45, %v634_v48  ;;  %v639_v57 = vmul.f32 %v637_v46, %v633_v47  ;;  %v645_v30 = vmul.f32 %v643_v8, %v1661_v15  ;;  %v646_v31 = vmul.f32 %v644_v9, %v1663_v16  ;;  %v700_v46 = vld [vmem:[#allocation2 + $0x1d8] sm:$0xff]  ;;  %v727_v8 = vld [vmem:[#allocation2 + $0x1f0] sm:$0xff] }
 0x2dc   :  { %v1823_v10 = vpop.permute.xlu1 %649  ;;  %v728_v9 = vld [vmem:[#allocation2 + $0x1f8] sm:$0xff] }
 0x2dd   :  { %v1825_v11 = vpop.permute.xlu0 %651  ;;  %v640_v23 = vadd.f32 %v638_v56, %v626_v49  ;;  %v641_v59 = vadd.f32 %v639_v57, %v627_v50 }
 0x2de   :  { %v654_v25 = vsel %vm653_vm12, %v1823_v10, %v1825_v11  ;;  %v655_v26 = vsel %vm653_vm12, %v1825_v11, %v1823_v10  ;;  %vm849_vm12 = vcmp.lt.s32.totalorder %v1723_v18, 95 }
 0x2df   :  { %v647_v10 = vadd.f32 %v645_v30, %v640_v23  ;;  %v648_v11 = vadd.f32 %v646_v31, %v641_v59  ;;  %v659_v37 = vmul.f32 %v657_v61, %v654_v25  ;;  %v660_v38 = vmul.f32 %v658_v24, %v655_v26  ;;  %v741_v25 = vld [vmem:[#allocation2 + $0x200] sm:$0xff]  ;;  %v742_v26 = vld [vmem:[#allocation2 + $0x208] sm:$0xff] }
 0x2e0   :  { %v1827_v12 = vpop.permute.xlu1 %663 }
 0x2e1   :  { %v1829_v13 = vpop.permute.xlu0 %665  ;;  %v662_v48 = vadd.f32 %v660_v38, %v648_v11  ;;  %v756_v11 = vld [vmem:[#allocation2 + $0x218] sm:$0xff] }
 0x2e2   :  { %v668_v34 = vsel %vm667_vm13, %v1827_v12, %v1829_v13  ;;  %v669_v35 = vsel %vm667_vm13, %v1829_v13, %v1827_v12  ;;  %v699_v13 = vld [vmem:[#allocation2 + $0x1d0] sm:$0xff]  ;;  %vm863_vm13 = vcmp.lt.s32.totalorder %v1723_v18, 94 }
 0x2e3   :  { %v673_v44 = vmul.f32 %v671_v4, %v668_v34  ;;  %v674_v45 = vmul.f32 %v672_v33, %v669_v35 }
 0x2e4   :  { %v1831_v14 = vpop.permute.xlu1 %677 }
 0x2e5   :  { %v1833_v17 = vpop.permute.xlu0 %679 }
 0x2e6   :  { %v682_v2 = vsel %vm681_vm14, %v1831_v14, %v1833_v17  ;;  %v683_v41 = vsel %vm681_vm14, %v1833_v17, %v1831_v14  ;;  %v661_v17 = vadd.f32 %v659_v37, %v647_v10  ;;  %v755_v10 = vld [vmem:[#allocation2 + $0x210] sm:$0xff]  ;;  %vm877_vm14 = vcmp.lt.s32.totalorder %v1723_v18, 93 }
 0x2e7   :  { %v687_v52 = vmul.f32 %v685_v40, %v682_v2  ;;  %v688_v6 = vmul.f32 %v686_v5, %v683_v41  ;;  %v769_v2 = vld [vmem:[#allocation2 + $0x220] sm:$0xff]  ;;  %v770_v41 = vld [vmem:[#allocation2 + $0x228] sm:$0xff] }
 0x2e8   :  { %v1835_v19 = vpop.permute.xlu1 %691  ;;  %v675_v57 = vadd.f32 %v673_v44, %v661_v17  ;;  %v783_v17 = vld [vmem:[#allocation2 + $0x230] sm:$0xff] }
 0x2e9   :  { %v1837_v20 = vpop.permute.xlu0 %693 }
 0x2ea   :  { %v696_v47 = vsel %vm695_vm15, %v1835_v19, %v1837_v20  ;;  %v697_v14 = vsel %vm695_vm15, %v1837_v20, %v1835_v19  ;;  %v676_v19 = vadd.f32 %v674_v45, %v662_v48  ;;  %v784_v48 = vld [vmem:[#allocation2 + $0x238] sm:$0xff]  ;;  %vm891_vm15 = vcmp.lt.s32.totalorder %v1723_v18, 83 }
 0x2eb   :  { %v701_v20 = vmul.f32 %v699_v13, %v696_v47  ;;  %v702_v49 = vmul.f32 %v700_v46, %v697_v14 }
 0x2ec   :  { %v1839_v21 = vpop.permute.xlu1 %705  ;;  %v690_v59 = vadd.f32 %v688_v6, %v676_v19 }
 0x2ed   :  { %v1842_v22 = vpop.permute.xlu0 %707 }
 0x2ee   :  { %v710_v55 = vsel %vm709_vm2, %v1839_v21, %v1842_v22  ;;  %v711_v58 = vsel %vm709_vm2, %v1842_v22, %v1839_v21  ;;  %v689_v22 = vadd.f32 %v687_v52, %v675_v57  ;;  %v704_v4 = vadd.f32 %v702_v49, %v690_v59 }
 0x2ef   :  { %v715_v61 = vmul.f32 %v713_v7, %v710_v55  ;;  %v716_v24 = vmul.f32 %v714_v53, %v711_v58  ;;  %v797_v55 = vld [vmem:[#allocation2 + $0x240] sm:$0xff]  ;;  %v798_v58 = vld [vmem:[#allocation2 + $0x248] sm:$0xff]  ;;  %vm905_vm2 = vcmp.lt.s32.totalorder %v1723_v18, 82 }
 0x2f0   :  { %v1845_v27 = vpop.permute.xlu1 %719 }
 0x2f1   :  { %v1848_v28 = vpop.permute.xlu0 %721  ;;  %v718_v38 = vadd.f32 %v716_v24, %v704_v4 }
 0x2f2   :  { %v724_v23 = vsel %vm723_vm3, %v1845_v27, %v1848_v28  ;;  %v725_v21 = vsel %vm723_vm3, %v1848_v28, %v1845_v27  ;;  %v703_v28 = vadd.f32 %v701_v20, %v689_v22  ;;  %vm919_vm3 = vcmp.lt.s32.totalorder %v1723_v18, 81 }
 0x2f3   :  { %v729_v33 = vmul.f32 %v727_v8, %v724_v23  ;;  %v730_v34 = vmul.f32 %v728_v9, %v725_v21  ;;  %v811_v23 = vld [vmem:[#allocation2 + $0x250] sm:$0xff]  ;;  %v812_v21 = vld [vmem:[#allocation2 + $0x258] sm:$0xff] }
 0x2f4   :  { %v1851_v39 = vpop.permute.xlu1 %733 }
 0x2f5   :  { %v1854_v42 = vpop.permute.xlu0 %735  ;;  %v732_v13 = vadd.f32 %v730_v34, %v718_v38 }
 0x2f6   :  { %v738_v30 = vsel %vm737_vm4, %v1851_v39, %v1854_v42  ;;  %v739_v31 = vsel %vm737_vm4, %v1854_v42, %v1851_v39  ;;  %v717_v42 = vadd.f32 %v715_v61, %v703_v28  ;;  %vm933_vm4 = vcmp.lt.s32.totalorder %v1723_v18, 80 }
 0x2f7   :  { %v743_v40 = vmul.f32 %v741_v25, %v738_v30  ;;  %v744_v5 = vmul.f32 %v742_v26, %v739_v31  ;;  %v825_v25 = vld [vmem:[#allocation2 + $0x260] sm:$0xff]  ;;  %v826_v26 = vld [vmem:[#allocation2 + $0x268] sm:$0xff] }
 0x2f8   :  { %v1868_v60 = vpop.permute.xlu1 %747 }
 0x2f9   :  { %v1870_v1 = vpop.permute.xlu0 %749  ;;  %v746_v6 = vadd.f32 %v744_v5, %v732_v13  ;;  %v854_v5 = vld [vmem:[#allocation2 + $0x288] sm:$0xff] }
 0x2fa   :  { %v752_v37 = vsel %vm751_vm5, %v1868_v60, %v1870_v1  ;;  %v753_v39 = vsel %vm751_vm5, %v1870_v1, %v1868_v60  ;;  %v731_v1 = vadd.f32 %v729_v33, %v717_v42  ;;  %vm947_vm5 = vcmp.lt.s32.totalorder %v1723_v18, 79 }
 0x2fb   :  { %v757_v46 = vmul.f32 %v755_v10, %v752_v37  ;;  %v758_v47 = vmul.f32 %v756_v11, %v753_v39  ;;  %v839_v10 = vld [vmem:[#allocation2 + $0x270] sm:$0xff]  ;;  %v840_v11 = vld [vmem:[#allocation2 + $0x278] sm:$0xff] }
 0x2fc   :  { %v1890_v63 = vpop.permute.xlu1 %761 }
 0x2fd   :  { %v1892_v36 = vpop.permute.xlu0 %763  ;;  %v760_v20 = vadd.f32 %v758_v47, %v746_v6  ;;  %v868_v47 = vld [vmem:[#allocation2 + $0x298] sm:$0xff]  ;;  %v882_v6 = vld [vmem:[#allocation2 + $0x2a8] sm:$0xff] }
 0x2fe   :  { %v766_v44 = vsel %vm765_vm6, %v1890_v63, %v1892_v36  ;;  %v767_v45 = vsel %vm765_vm6, %v1892_v36, %v1890_v63  ;;  %v745_v36 = vadd.f32 %v743_v40, %v731_v1  ;;  %v853_v40 = vld [vmem:[#allocation2 + $0x280] sm:$0xff]  ;;  %vm961_vm6 = vcmp.lt.s32.totalorder %v1723_v18, 78 }
 0x2ff   :  { %v771_v7 = vmul.f32 %v769_v2, %v766_v44  ;;  %v772_v53 = vmul.f32 %v770_v41, %v767_v45 }
 0x300   :  { %v1910_v51 = vpop.permute.xlu1 %775 }
 0x301   :  { %v1912_v54 = vpop.permute.xlu0 %777  ;;  %v774_v59 = vadd.f32 %v772_v53, %v760_v20  ;;  %v896_v20 = vld [vmem:[#allocation2 + $0x2b8] sm:$0xff] }
 0x302   :  { %v780_v52 = vsel %vm779_vm7, %v1910_v51, %v1912_v54  ;;  %v781_v63 = vsel %vm779_vm7, %v1912_v54, %v1910_v51  ;;  %v759_v54 = vadd.f32 %v757_v46, %v745_v36  ;;  %v867_v46 = vld [vmem:[#allocation2 + $0x290] sm:$0xff]  ;;  %v881_v36 = vld [vmem:[#allocation2 + $0x2a0] sm:$0xff]  ;;  %vm975_vm7 = vcmp.lt.s32.totalorder %v1723_v18, 77 }
 0x303   :  { %v785_v49 = vmul.f32 %v783_v17, %v780_v52  ;;  %v786_v8 = vmul.f32 %v784_v48, %v781_v63 }
 0x304   :  { %v1914_v62 = vpop.permute.xlu1 %789 }
 0x305   :  { %v1917_v3 = vpop.permute.xlu0 %791  ;;  %v788_v28 = vadd.f32 %v786_v8, %v774_v59 }
 0x306   :  { %v794_v57 = vsel %vm793_vm8, %v1914_v62, %v1917_v3  ;;  %v795_v19 = vsel %vm793_vm8, %v1917_v3, %v1914_v62  ;;  %v773_v3 = vadd.f32 %v771_v7, %v759_v54  ;;  %v895_v54 = vld [vmem:[#allocation2 + $0x2b0] sm:$0xff] }
 0x307   :  { %v799_v61 = vmul.f32 %v797_v55, %v794_v57  ;;  %v800_v24 = vmul.f32 %v798_v58, %v795_v19 }
 0x308   :  { %v1924_v29 = vpop.permute.xlu1 %803 }
 0x309   :  { %v1929_v32 = vpop.permute.xlu0 %805  ;;  %v802_v39 = vadd.f32 %v800_v24, %v788_v28 }
 0x30a   :  { %v808_v22 = vsel %vm807_vm9, %v1924_v29, %v1929_v32  ;;  %v809_v62 = vsel %vm807_vm9, %v1929_v32, %v1924_v29  ;;  %v787_v32 = vadd.f32 %v785_v49, %v773_v3 }
 0x30b   :  { %v813_v4 = vmul.f32 %v811_v23, %v808_v22  ;;  %v814_v33 = vmul.f32 %v812_v21, %v809_v62  ;;  %v909_v22 = vld [vmem:[#allocation2 + $0x2c0] sm:$0xff]  ;;  %v910_v62 = vld [vmem:[#allocation2 + $0x2c8] sm:$0xff] }
 0x30c   :  { %v1940_v43 = vpop.permute.xlu1 %817 }
 0x30d   :  { %v1943_v12 = vpop.permute.xlu0 %819  ;;  %v816_v44 = vadd.f32 %v814_v33, %v802_v39 }
 0x30e   :  { %v822_v30 = vsel %vm821_vm10, %v1940_v43, %v1943_v12  ;;  %v823_v31 = vsel %vm821_vm10, %v1943_v12, %v1940_v43  ;;  %v801_v12 = vadd.f32 %v799_v61, %v787_v32  ;;  %v924_v32 = vld [vmem:[#allocation2 + $0x2d8] sm:$0xff] }
 0x30f   :  { %v827_v42 = vmul.f32 %v825_v25, %v822_v30  ;;  %v828_v38 = vmul.f32 %v826_v26, %v823_v31 }
 0x310   :  { %v1959_v56 = vpop.permute.xlu1 %831 }
 0x311   :  { %v1961_v50 = vpop.permute.xlu0 %833  ;;  %v830_v48 = vadd.f32 %v828_v38, %v816_v44 }
 0x312   :  { %v836_v37 = vsel %vm835_vm11, %v1959_v56, %v1961_v50  ;;  %v837_v43 = vsel %vm835_vm11, %v1961_v50, %v1959_v56  ;;  %v815_v50 = vadd.f32 %v813_v4, %v801_v12 }
 0x313   :  { %v841_v45 = vmul.f32 %v839_v10, %v836_v37  ;;  %v842_v1 = vmul.f32 %v840_v11, %v837_v43  ;;  %v937_v37 = vld [vmem:[#allocation2 + $0x2e0] sm:$0xff]  ;;  %v938_v43 = vld [vmem:[#allocation2 + $0x2e8] sm:$0xff] }
 0x314   :  { %v1981_v27 = vpop.permute.xlu1 %845 }
 0x315   :  { %v1983_v35 = vpop.permute.xlu0 %847  ;;  %v844_v57 = vadd.f32 %v842_v1, %v830_v48 }
 0x316   :  { %v850_v2 = vsel %vm849_vm12, %v1981_v27, %v1983_v35  ;;  %v851_v41 = vsel %vm849_vm12, %v1983_v35, %v1981_v27  ;;  %v829_v35 = vadd.f32 %v827_v42, %v815_v50  ;;  %v952_v50 = vld [vmem:[#allocation2 + $0x2f8] sm:$0xff] }
 0x317   :  { %v855_v52 = vmul.f32 %v853_v40, %v850_v2  ;;  %v856_v63 = vmul.f32 %v854_v5, %v851_v41 }
 0x318   :  { %v2003_v60 = vpop.permute.xlu1 %859  ;;  %v843_v58 = vadd.f32 %v841_v45, %v829_v35  ;;  %v966_v35 = vld [vmem:[#allocation2 + $0x308] sm:$0xff] }
 0x319   :  { %v2005_v14 = vpop.permute.xlu0 %861 }
 0x31a   :  { %v864_v17 = vsel %vm863_vm13, %v2003_v60, %v2005_v14  ;;  %v865_v27 = vsel %vm863_vm13, %v2005_v14, %v2003_v60  ;;  %v857_v23 = vadd.f32 %v855_v52, %v843_v58 }
 0x31b   :  { %v869_v60 = vmul.f32 %v867_v46, %v864_v17  ;;  %v870_v14 = vmul.f32 %v868_v47, %v865_v27  ;;  %v965_v27 = vld [vmem:[#allocation2 + $0x300] sm:$0xff] }
 0x31c   :  { %v874_v51 = vpop.permute.xlu1 %873 }
 0x31d   :  { %v876_v9 = vpop.permute.xlu0 %875  ;;  %v871_v24 = vadd.f32 %v869_v60, %v857_v23 }
 0x31e   :  { %v878_v7 = vsel %vm877_vm14, %v874_v51, %v876_v9  ;;  %v879_v53 = vsel %vm877_vm14, %v876_v9, %v874_v51  ;;  %v858_v51 = vadd.f32 %v856_v63, %v844_v57 }
 0x31f   :  { %v883_v9 = vmul.f32 %v881_v36, %v878_v7  ;;  %v884_v21 = vmul.f32 %v882_v6, %v879_v53 }
 0x320   :  { %v888_v29 = vpop.permute.xlu1 %887  ;;  %v872_v25 = vadd.f32 %v870_v14, %v858_v51 }
 0x321   :  { %v890_v34 = vpop.permute.xlu0 %889  ;;  %v885_v33 = vadd.f32 %v883_v9, %v871_v24 }
 0x322   :  { %v892_v49 = vsel %vm891_vm15, %v888_v29, %v890_v34  ;;  %v893_v8 = vsel %vm891_vm15, %v890_v34, %v888_v29  ;;  %v923_v29 = vld [vmem:[#allocation2 + $0x2d0] sm:$0xff]  ;;  %v886_v34 = vadd.f32 %v884_v21, %v872_v25 }
 0x323   :  { %v897_v26 = vmul.f32 %v895_v54, %v892_v49  ;;  %v898_v30 = vmul.f32 %v896_v20, %v893_v8  ;;  %v980_v54 = vld [vmem:[#allocation2 + $0x318] sm:$0xff] }
 0x324   :  { %v902_v56 = vpop.permute.xlu1 %901 }
 0x325   :  { %v904_v13 = vpop.permute.xlu0 %903  ;;  %v899_v38 = vadd.f32 %v897_v26, %v885_v33  ;;  %v900_v40 = vadd.f32 %v898_v30, %v886_v34  ;;  %v997_v34 = vld [vmem:[%s2145_s5] sm:$0xff] }
 0x326   :  { %v906_v3 = vsel %vm905_vm2, %v902_v56, %v904_v13  ;;  %v907_v59 = vsel %vm905_vm2, %v904_v13, %v902_v56  ;;  %v951_v56 = vld [vmem:[#allocation2 + $0x2f0] sm:$0xff] }
 0x327   :  { %v911_v10 = vmul.f32 %v909_v22, %v906_v3  ;;  %v912_v11 = vmul.f32 %v910_v62, %v907_v59 }
 0x328   :  { %v916_v55 = vpop.permute.xlu1 %915 }
 0x329   :  { %v918_v19 = vpop.permute.xlu0 %917  ;;  %v913_v1 = vadd.f32 %v911_v10, %v899_v38  ;;  %v914_v13 = vadd.f32 %v912_v11, %v900_v40 }
 0x32a   :  { %v920_v28 = vsel %vm919_vm3, %v916_v55, %v918_v19  ;;  %v921_v4 = vsel %vm919_vm3, %v918_v19, %v916_v55  ;;  %v979_v19 = vld [vmem:[#allocation2 + $0x310] sm:$0xff] }
 0x32b   :  { %v925_v5 = vmul.f32 %v923_v29, %v920_v28  ;;  %v926_v2 = vmul.f32 %v924_v32, %v921_v4 }
 0x32c   :  { %v930_v61 = vpop.permute.xlu1 %929 }
 0x32d   :  { %v932_v31 = vpop.permute.xlu0 %931  ;;  %v927_v48 = vadd.f32 %v925_v5, %v913_v1  ;;  %v928_v52 = vadd.f32 %v926_v2, %v914_v13  ;;  %v1091_v1 = vld [vmem:[%s2147_s7 + $0x8] sm:$0xff] }
 0x32e   :  { %v934_v12 = vsel %vm933_vm4, %v930_v61, %v932_v31  ;;  %v935_v39 = vsel %vm933_vm4, %v932_v31, %v930_v61 }
 0x32f   :  { %v939_v46 = vmul.f32 %v937_v37, %v934_v12  ;;  %v940_v47 = vmul.f32 %v938_v43, %v935_v39 }
 0x330   :  { %v944_v42 = vpop.permute.xlu1 %943 }
 0x331   :  { %v946_v41 = vpop.permute.xlu0 %945  ;;  %v941_v55 = vadd.f32 %v939_v46, %v927_v48  ;;  %v942_v58 = vadd.f32 %v940_v47, %v928_v52 }
 0x332   :  { %v948_v44 = vsel %vm947_vm5, %v944_v42, %v946_v41  ;;  %v949_v45 = vsel %vm947_vm5, %v946_v41, %v944_v42 }
 0x333   :  { %v953_v63 = vmul.f32 %v951_v56, %v948_v44  ;;  %v954_v36 = vmul.f32 %v952_v50, %v949_v45  ;;  %v1090_v45 = vld [vmem:[%s2147_s7] sm:$0xff] }
 0x334   :  { %v958_v17 = vpop.permute.xlu1 %957 }
 0x335   :  { %v960_v6 = vpop.permute.xlu0 %959  ;;  %v955_v20 = vadd.f32 %v953_v63, %v941_v55  ;;  %v956_v49 = vadd.f32 %v954_v36, %v942_v58 }
 0x336   :  { %v962_v7 = vsel %vm961_vm6, %v958_v17, %v960_v6  ;;  %v963_v53 = vsel %vm961_vm6, %v960_v6, %v958_v17 }
 0x337   :  { %v967_v57 = vmul.f32 %v965_v27, %v962_v7  ;;  %v968_v60 = vmul.f32 %v966_v35, %v963_v53 }
 0x338   :  { %v972_v14 = vpop.permute.xlu1 %971 }
 0x339   :  { %v974_v8 = vpop.permute.xlu0 %973  ;;  %v969_v9 = vadd.f32 %v967_v57, %v955_v20  ;;  %v970_v21 = vadd.f32 %v968_v60, %v956_v49 }
 0x33a   :  { %v976_v23 = vsel %vm975_vm7, %v972_v14, %v974_v8  ;;  %v977_v51 = vsel %vm975_vm7, %v974_v8, %v972_v14 }
 0x33b   :  { %v981_v22 = vmul.f32 %v979_v19, %v976_v23  ;;  %v982_v62 = vmul.f32 %v980_v54, %v977_v51 }
 0x33d   :  { %v983_v3 = vadd.f32 %v981_v22, %v969_v9  ;;  %v984_v59 = vadd.f32 %v982_v62, %v970_v21 }
 0x33f   :  { %v985_v18 = vadd.f32 %v983_v3, %v1661_v15  ;;  %v986_v61 = vadd.f32 %v984_v59, %v1663_v16 }
 0x341   :  { %v989_v24 = vmul.f32 0.70710677, %v985_v18  ;;  %v990_v25 = vmul.f32 0.70710677, %v986_v61  ;;  %v987_v31 = vmul.f32 0.5, %v985_v18  ;;  %v988_v32 = vmul.f32 0.5, %v986_v61 }
 0x342   :  { %v1207_v61 = vld [vmem:[%s2149_s9] sm:$0xff] }
 0x343   :  { %1413 = verf.f32 %v989_v24  ;;  %v1208_v24 = vld [vmem:[%s2149_s9 + $0x8] sm:$0xff]  ;;  %s1451_s9 = scalar_lea.vmem %s1314_s21, 512 }
 0x344   :  { %1415 = verf.f32 %v990_v25  ;;  %p1452_p8 = scmp.ne.s32.totalorder %s1314_s21, %s1451_s9  ;;  %p1457_p10 = scmp.lt.s32.totalorder %s1451_s9, %s1451_s9 }
 0x346   :  { %p1458_p11 = por %p1457_p10, %p1456_p9 }
 0x348   :  { %p1459_p12 = pnand %p1458_p11, %p1452_p8 }
 0x349   :  { %v1002_v15 = vpop.permute.xlu1 %1001 }
 0x34a   :  { %v1097_v13 = vpop.permute.xlu0 %1096 }
 0x34d   :  { %v1414_v26 = vpop.eup %1413  ;;  %v1102_v48 = vpop.permute.xlu1 %1101 }
 0x34e   :  { %v1416_v30 = vpop.eup %1415  ;;  %v993_v29 = vadd.f32 1.0, %v1414_v26  ;;  %v1214_v25 = vpop.permute.xlu0 %1213 }
 0x34f   :  { %v994_v28 = vadd.f32 1.0, %v1416_v30 }
 0x350   :  { %v995_v4 = vmul.f32 %v993_v29, %v987_v31 }
 0x351   :  { %v996_v33 = vmul.f32 %v994_v28, %v988_v32  ;;  %v1219_v32 = vpop.permute.xlu1 %1218 }
 0x353   :  { %1007 = vmatprep.subr.mxu1 %v996_v33 }
 0x354   :  { %1008 = vmatpush1.msra.mxu1 %v995_v4 }
 0x355   :  { %1329 = vmatmul.mubr.msk.f32.vlgmr.msra.gmra.mrb[2].mxu1 %vm75_vm0, %v997_v34 }
 0x356   :  { %1291 = vmatprep.mubr.f32.mxu1 %v1480_v0 }
 0x428   :  { %v1073_v16 = vpop.f32.mrb[2].mxu1 }
 0x429   :  { %v1074_v10 = vadd.f32 %v1073_v16, %v1002_v15  ;;  %v1075_v11 = vpop.f32.mrb[3].mxu1 }
 0x42a   :  { %v1076_v37 = vadd.f32 %v1075_v11, %v1002_v15 }
 0x42b   :  { %v1078_v43 = vadd.f32 %v1074_v10, %v995_v4 }
 0x42c   :  { %v1079_v12 = vadd.f32 %v1076_v37, %v996_v33 }
 0x42d   :  { %v1082_v39 = vmul.f32 0.70710677, %v1078_v43  ;;  %v1080_v56 = vmul.f32 0.5, %v1078_v43 }
 0x42e   :  { %v1083_v42 = vmul.f32 0.70710677, %v1079_v12  ;;  %v1081_v2 = vmul.f32 0.5, %v1079_v12 }
 0x42f   :  { %1417 = verf.f32 %v1082_v39 }
 0x430   :  { %1419 = verf.f32 %v1083_v42 }
 0x439   :  { %v1418_v38 = vpop.eup %1417 }
 0x43a   :  { %v1420_v40 = vpop.eup %1419  ;;  %v1086_v5 = vadd.f32 1.0, %v1418_v38 }
 0x43b   :  { %v1087_v41 = vadd.f32 1.0, %v1420_v40 }
 0x43c   :  { %v1088_v44 = vmul.f32 %v1086_v5, %v1080_v56 }
 0x43d   :  { %v1089_v50 = vmul.f32 %v1087_v41, %v1081_v2 }
 0x43f   :  { %1110 = vmatprep.subr.mxu0 %v1089_v50 }
 0x440   :  { %1111 = vmatpush1.msra.mxu0 %v1088_v44 }
 0x441   :  { %1330 = vmatmul.mubr.msk.f32.vlgmr.msra.gmra.mrb[4].mxu0 %vm75_vm0, %v1090_v45 }
 0x442   :  { %1180 = vmatprep.mubr.f32.mxu0 %v1480_v0 }
 0x445   :  { %1331 = vmatmul.mubr.msk.f32.gmra.mrb[6].mxu0 %vm75_vm0, %v1091_v1 }
 0x514   :  { %v1176_v46 = vpop.f32.mrb[4].mxu0 }
 0x515   :  { %v1177_v47 = vadd.f32 %v1176_v46, %v1097_v13  ;;  %v1178_v17 = vpop.f32.mrb[5].mxu0 }
 0x516   :  { %v1179_v27 = vadd.f32 %v1178_v17, %v1097_v13 }
 0x517   :  { %v1191_v35 = vmul.f32 0.70710677, %v1177_v47  ;;  %v1187_v20 = vmul.f32 0.5, %v1177_v47 }
 0x518   :  { %v1192_v52 = vmul.f32 0.70710677, %v1179_v27  ;;  %v1182_v63 = vpop.f32.mrb[6].mxu0  ;;  %v1188_v23 = vmul.f32 0.5, %v1179_v27 }
 0x519   :  { %1421 = verf.f32 %v1191_v35  ;;  %v1183_v36 = vadd.f32 %v1182_v63, %v1102_v48  ;;  %v1184_v6 = vpop.f32.mrb[7].mxu0 }
 0x51a   :  { %1423 = verf.f32 %v1192_v52  ;;  %v1185_v7 = vadd.f32 %v1184_v6, %v1102_v48 }
 0x51b   :  { %v1193_v53 = vmul.f32 0.70710677, %v1183_v36  ;;  %v1189_v49 = vmul.f32 0.5, %v1183_v36 }
 0x51c   :  { %v1194_v55 = vmul.f32 0.70710677, %v1185_v7  ;;  %v1190_v51 = vmul.f32 0.5, %v1185_v7 }
 0x51d   :  { %1425 = verf.f32 %v1193_v53 }
 0x51e   :  { %1427 = verf.f32 %v1194_v55 }
 0x523   :  { %v1422_v58 = vpop.eup %1421 }
 0x524   :  { %v1424_v57 = vpop.eup %1423  ;;  %v1199_v60 = vadd.f32 1.0, %v1422_v58 }
 0x525   :  { %v1200_v19 = vadd.f32 1.0, %v1424_v57 }
 0x526   :  { %v1203_v21 = vmul.f32 %v1199_v60, %v1187_v20 }
 0x527   :  { %v1426_v14 = vpop.eup %1425  ;;  %v1204_v62 = vmul.f32 %v1200_v19, %v1188_v23 }
 0x528   :  { %v1428_v54 = vpop.eup %1427  ;;  %v1201_v8 = vadd.f32 1.0, %v1426_v14 }
 0x529   :  { %v1202_v9 = vadd.f32 1.0, %v1428_v54 }
 0x52a   :  { %v1205_v22 = vmul.f32 %v1201_v8, %v1189_v49 }
 0x52b   :  { %v1206_v3 = vmul.f32 %v1202_v9, %v1190_v51 }
 0x52c   :  { %v1340_v59 = vpack.c.bf16 %v1205_v22, %v1203_v21 }
 0x52d   :  { %v1338_v18 = vpack.c.bf16 %v1206_v3, %v1204_v62 }
 0x52f   :  { %1339 = vmatprep.subr.bf16.mxu1 %v1338_v18 }
 0x530   :  { %1341 = vmatpush1.bf16.msra.mxu1 %v1340_v59 }
 0x533   :  { %1332 = vmatmul.mubr.msk.f32.vlgmr.msra.gmra.mrb[4].mxu1 %vm186_vm1, %v1207_v61 }
 0x534   :  { %1297 = vmatprep.mubr.f32.mxu1 %v1480_v0 }
 0x537   :  { %1333 = vmatmul.mubr.msk.f32.gmra.mrb[6].mxu1 %vm186_vm1, %v1208_v24 }
 0x606   :  { %v1293_v26 = vpop.f32.mrb[4].mxu1 }
 0x607   :  { %v1294_v30 = vadd.f32 %v1293_v26, %v1214_v25  ;;  %v1295_v31 = vpop.f32.mrb[5].mxu1 }
 0x608   :  { %v1296_v29 = vadd.f32 %v1295_v31, %v1214_v25 }
 0x609   :  { %1304 = vst [vmem:[#allocation5] sm:$0xff] %v1294_v30 }
 0x60a   :  { %1305 = vst [vmem:[#allocation5 + $0x8] sm:$0xff] %v1296_v29  ;;  %v1299_v28 = vpop.f32.mrb[6].mxu1 }
 0x60b   :  { %v1300_v4 = vadd.f32 %v1299_v28, %v1219_v32  ;;  %v1301_v33 = vpop.f32.mrb[7].mxu1 }
 0x60c   :  { %v1302_v0 = vadd.f32 %v1301_v33, %v1219_v32 }
 0x60d   :  { %1306 = vst [vmem:[#allocation5 + $0x10] sm:$0xff] %v1300_v4 }
 0x60e   :  { %1307 = vst [vmem:[#allocation5 + $0x18] sm:$0xff] %v1302_v0 }
 0x60f   :  { %1462 = shalt.err (!%p1459_p12)
}
 0x610   :  { %s1463_s3 = scalar_lea.hbm %s2153_s13, 512 }
 0x611   :  { %p1464_p13 = scmp.ne.s32.totalorder %s2153_s13, %s1463_s3  ;;  %p1467_p0 = scmp.lt.u32.totalorder %s1463_s3, %s2153_s13 }
 0x613   :  { %p1469_p1 = pnand %p1467_p0, %p1464_p13 }
 0x615   :  { %1472 = shalt.err (!%p1469_p1)
}
 0x616   :  { %1319 = dma.vmem_to_hbm [thread:$0]  %s1314_s21, 512, %s2153_s13, [#allocation4], %s1478_s18, %s1478_s18, %s1479_s19  }
 0x617   :  { %1475 = dma.done.wait [#allocation4], 512  }
 0x618   :  { %1476 = vsyncadd [#allocation4], 4294966784 }
 0x619   :  { %1323 = vsyncpa [#allocation3], 1 }
 0x61a   :  { %1324 = vsyncpa [#allocation4], 1 }

</bundles_post_ra>
